<compile_context>
chip_gen: v5e
topology: v5e:2x2
jax: 0.10.0
libtpu: 0.0.40
codegen_flags: <defaults>
</compile_context>

<pallas_src>
import functools

import jax
import jax.numpy as jnp
from jax.experimental import pallas as pl
from jax.experimental.pallas import tpu as pltpu


def _cheap_conv_kernel(x_ref, w_ref, o_ref, *, K, W):
    """Fused depthwise-separable conv as K*K accumulating MXU matmuls.

    x_ref: (B_tile, HW_pad, C)        flattened-spatial input (row = h*W + w on
                                      sublanes, C on lanes), padded so every tap
                                      window stays in bounds.
    w_ref: (K*K, C, Cout_pad)         folded weights  w[t, c, o] = dw[c,kh,kw]*pw[o,c]
    o_ref: (B_tile, Hout*W, Cout_pad) lane-dense output (cols w >= Wout trimmed outside)
    """
    KK = w_ref.shape[0]
    Cout_pad = w_ref.shape[2]
    M = o_ref.shape[1]  # Hout * W rows per image

    for b in range(x_ref.shape[0]):                # unrolled over batch tile
        acc = jnp.zeros((M, Cout_pad), jnp.float32)
        for t in range(KK):                        # unrolled over the K*K taps
            off = (t // K) * W + (t % K)           # static flat offset of this tap
            # Contiguous window as a ref slice -> no materialized shifted copies.
            xs = x_ref[b, pl.ds(off, M), :]        # (M, C)
            acc = acc + jnp.dot(xs, w_ref[t],      # MXU matmul, f32 accumulate
                                preferred_element_type=jnp.float32)
        o_ref[b] = acc.astype(o_ref.dtype)


def cheap_conv(x_nchw, dw_weight, pw_weight, kernel_size=3):
    """Depthwise-separable conv (stride=1, padding=0, dilation=1, no bias).

    x_nchw:    (N, C, H, W)            -- PyTorch NCHW layout
    dw_weight: (C, 1, K, K)            -- PyTorch depthwise Conv2d weight
    pw_weight: (Cout, C, 1, 1)         -- PyTorch pointwise Conv2d weight
    returns:   (N, Cout, Hout, Wout)   with Hout = H - K + 1
    """
    N, C, H, W = x_nchw.shape
    K = kernel_size
    Cout = pw_weight.shape[0]
    Hout, Wout = H - K + 1, W - K + 1
    assert Hout > 0 and Wout > 0
    KK = K * K

    LANES = 128
    Cout_pad = -(-Cout // LANES) * LANES          # lane-dense output last dim
    M = Hout * W                                  # matmul rows per image (224 here, 8-aligned)

    # Pad the flattened spatial axis so the largest tap offset + M stays in bounds.
    max_off = (K - 1) * W + (K - 1)
    HW_pad = -(-(H * W + max_off) // 8) * 8

    # Batch tiling: amortize per-grid-step overhead but keep >= 2 parallel steps.
    B_TILE = max(1, min(8, N // 2)) if N >= 2 else 1
    N_pad = -(-N // B_TILE) * B_TILE

    # NCHW -> flattened NHWC: (N, H*W, C), then pad batch & flattened spatial.
    x = jnp.transpose(x_nchw, (0, 2, 3, 1)).reshape(N, H * W, C)
    x = jnp.pad(x, ((0, N_pad - N), (0, HW_pad - H * W), (0, 0)))

    # Fold depthwise into pointwise:  w_comb[t, c, o] = dw[c, kh, kw] * pw[o, c].
    dw = jnp.transpose(dw_weight[:, 0, :, :], (1, 2, 0)).reshape(KK, C)   # (KK, C)
    pw = jnp.transpose(pw_weight[:, :, 0, 0], (1, 0))                     # (C, Cout)
    w_comb = dw[:, :, None] * pw[None, :, :]                              # (KK, C, Cout)
    w_comb = jnp.pad(w_comb, ((0, 0), (0, 0), (0, Cout_pad - Cout))).astype(x.dtype)

    grid = (N_pad // B_TILE,)
    out = pl.pallas_call(
        functools.partial(_cheap_conv_kernel, K=K, W=W),
        out_shape=jax.ShapeDtypeStruct((N_pad, M, Cout_pad), x.dtype),
        grid_spec=pltpu.PrefetchScalarGridSpec(
            num_scalar_prefetch=0,
            grid=grid,
            in_specs=[
                pl.BlockSpec((B_TILE, HW_pad, C), lambda n: (n, 0, 0)),
                # Constant block index -> fetched once, revisited every step.
                pl.BlockSpec((KK, C, Cout_pad), lambda n: (0, 0, 0)),
            ],
            out_specs=pl.BlockSpec((B_TILE, M, Cout_pad), lambda n: (n, 0, 0)),
        ),
        compiler_params=pltpu.CompilerParams(
            dimension_semantics=("parallel",)),
    )(x, w_comb)

    # (N_pad, Hout*W, Cout_pad) -> drop batch/spatial/channel padding -> NCHW.
    out = out[:N].reshape(N, Hout, W, Cout_pad)[:, :, :Wout, :Cout]
    return jnp.transpose(out, (0, 3, 1, 2))


def _reference(x_nchw, dw_weight, pw_weight):
    """Pure-JAX reference (lax conv) for correctness checking."""
    C = x_nchw.shape[1]
    dn = jax.lax.conv_dimension_numbers(
        x_nchw.shape, dw_weight.shape, ('NCHW', 'OIHW', 'NCHW'))
    y = jax.lax.conv_general_dilated(
        x_nchw, dw_weight, window_strides=(1, 1), padding='VALID',
        dimension_numbers=dn, feature_group_count=C)
    dn2 = jax.lax.conv_dimension_numbers(
        y.shape, pw_weight.shape, ('NCHW', 'OIHW', 'NCHW'))
    return jax.lax.conv_general_dilated(
        y, pw_weight, window_strides=(1, 1), padding='VALID',
        dimension_numbers=dn2)


if __name__ == "__main__":
    # Small shapes consistent with the module: batch=2, C_in=4, C_out=8, 16x16 spatial.
    N, C_in, C_out, H, W, K = 2, 4, 8, 16, 16, 3

    key = jax.random.PRNGKey(0)
    kx, kdw, kpw = jax.random.split(key, 3)

    x = jax.random.normal(kx, (N, C_in, H, W), dtype=jnp.float32)
    dw_weight = jax.random.normal(kdw, (C_in, 1, K, K), dtype=jnp.float32) * 0.1
    pw_weight = jax.random.normal(kpw, (C_out, C_in, 1, 1), dtype=jnp.float32) * 0.1

    out = cheap_conv(x, dw_weight, pw_weight, kernel_size=K)
    out = jax.block_until_ready(out)

    ref = jax.block_until_ready(_reference(x, dw_weight, pw_weight))
    assert out.shape == (N, C_out, H - K + 1, W - K + 1), out.shape
    assert jnp.allclose(out, ref, atol=1e-4, rtol=1e-4), "mismatch vs reference"

    print("KERNEL_OK")
</pallas_src>

<mosaic_0001>
module attributes {stable_mosaic.version = 11 : i64} {
  func.func @_cheap_conv_kernel(%arg0: i32, %arg1: memref<1x296x4xf32, #tpu.memory_space<vmem>>, %arg2: memref<9x4x128xf32, #tpu.memory_space<vmem>>, %arg3: memref<1x224x128xf32, #tpu.memory_space<vmem>>) attributes {dimension_semantics = [#tpu.dimension_semantics<parallel>], iteration_bounds = array<i64: 2>, scalar_prefetch = 0 : i64, scratch_operands = 0 : i64, tpu.core_type = #tpu.core_type<tc>, window_params = [{transform_indices = @transform_0, window_bounds = array<i64: 1, 296, 4>}, {pipeline_mode = #tpu.pipeline_mode<synchronous>, transform_indices = @transform_1, window_bounds = array<i64: 9, 4, 128>}, {transform_indices = @transform_2, window_bounds = array<i64: 1, 224, 128>}]} {
    %cst = arith.constant 0.000000e+00 : f32
    %0 = vector.broadcast %cst : f32 to vector<224x128xf32>
    %c0 = arith.constant 0 : index
    %c0_0 = arith.constant 0 : index
    %c0_1 = arith.constant 0 : index
    %1 = vector.load %arg1[%c0, %c0_0, %c0_1] : memref<1x296x4xf32, #tpu.memory_space<vmem>>, vector<1x224x4xf32>
    %2 = vector.shape_cast %1 : vector<1x224x4xf32> to vector<224x4xf32>
    %c0_2 = arith.constant 0 : index
    %c0_3 = arith.constant 0 : index
    %c0_4 = arith.constant 0 : index
    %3 = vector.load %arg2[%c0_2, %c0_3, %c0_4] : memref<9x4x128xf32, #tpu.memory_space<vmem>>, vector<1x4x128xf32>
    %4 = vector.shape_cast %3 : vector<1x4x128xf32> to vector<4x128xf32>
    %cst_5 = arith.constant dense<0.000000e+00> : vector<224x128xf32>
    %5 = tpu.matmul %2, %4, %cst_5 {dimension_numbers = #tpu.dot_dimension_numbers<[1], [0], [0], [1], [0, 0, 1, 1], [], []>} : vector<224x4xf32>, vector<4x128xf32>, vector<224x128xf32> -> vector<224x128xf32>
    %6 = arith.addf %0, %5 : vector<224x128xf32>
    %c0_6 = arith.constant 0 : index
    %c1 = arith.constant 1 : index
    %c0_7 = arith.constant 0 : index
    %7 = vector.load %arg1[%c0_6, %c1, %c0_7] : memref<1x296x4xf32, #tpu.memory_space<vmem>>, vector<1x224x4xf32>
    %8 = vector.shape_cast %7 : vector<1x224x4xf32> to vector<224x4xf32>
    %c1_8 = arith.constant 1 : index
    %c0_9 = arith.constant 0 : index
    %c0_10 = arith.constant 0 : index
    %9 = vector.load %arg2[%c1_8, %c0_9, %c0_10] : memref<9x4x128xf32, #tpu.memory_space<vmem>>, vector<1x4x128xf32>
    %10 = vector.shape_cast %9 : vector<1x4x128xf32> to vector<4x128xf32>
    %cst_11 = arith.constant dense<0.000000e+00> : vector<224x128xf32>
    %11 = tpu.matmul %8, %10, %cst_11 {dimension_numbers = #tpu.dot_dimension_numbers<[1], [0], [0], [1], [0, 0, 1, 1], [], []>} : vector<224x4xf32>, vector<4x128xf32>, vector<224x128xf32> -> vector<224x128xf32>
    %12 = arith.addf %6, %11 : vector<224x128xf32>
    %c0_12 = arith.constant 0 : index
    %c2 = arith.constant 2 : index
    %c0_13 = arith.constant 0 : index
    %13 = vector.load %arg1[%c0_12, %c2, %c0_13] : memref<1x296x4xf32, #tpu.memory_space<vmem>>, vector<1x224x4xf32>
    %14 = vector.shape_cast %13 : vector<1x224x4xf32> to vector<224x4xf32>
    %c2_14 = arith.constant 2 : index
    %c0_15 = arith.constant 0 : index
    %c0_16 = arith.constant 0 : index
    %15 = vector.load %arg2[%c2_14, %c0_15, %c0_16] : memref<9x4x128xf32, #tpu.memory_space<vmem>>, vector<1x4x128xf32>
    %16 = vector.shape_cast %15 : vector<1x4x128xf32> to vector<4x128xf32>
    %cst_17 = arith.constant dense<0.000000e+00> : vector<224x128xf32>
    %17 = tpu.matmul %14, %16, %cst_17 {dimension_numbers = #tpu.dot_dimension_numbers<[1], [0], [0], [1], [0, 0, 1, 1], [], []>} : vector<224x4xf32>, vector<4x128xf32>, vector<224x128xf32> -> vector<224x128xf32>
    %18 = arith.addf %12, %17 : vector<224x128xf32>
    %c0_18 = arith.constant 0 : index
    %c16 = arith.constant 16 : index
    %c0_19 = arith.constant 0 : index
    %19 = vector.load %arg1[%c0_18, %c16, %c0_19] : memref<1x296x4xf32, #tpu.memory_space<vmem>>, vector<1x224x4xf32>
    %20 = vector.shape_cast %19 : vector<1x224x4xf32> to vector<224x4xf32>
    %c3 = arith.constant 3 : index
    %c0_20 = arith.constant 0 : index
    %c0_21 = arith.constant 0 : index
    %21 = vector.load %arg2[%c3, %c0_20, %c0_21] : memref<9x4x128xf32, #tpu.memory_space<vmem>>, vector<1x4x128xf32>
    %22 = vector.shape_cast %21 : vector<1x4x128xf32> to vector<4x128xf32>
    %cst_22 = arith.constant dense<0.000000e+00> : vector<224x128xf32>
    %23 = tpu.matmul %20, %22, %cst_22 {dimension_numbers = #tpu.dot_dimension_numbers<[1], [0], [0], [1], [0, 0, 1, 1], [], []>} : vector<224x4xf32>, vector<4x128xf32>, vector<224x128xf32> -> vector<224x128xf32>
    %24 = arith.addf %18, %23 : vector<224x128xf32>
    %c0_23 = arith.constant 0 : index
    %c17 = arith.constant 17 : index
    %c0_24 = arith.constant 0 : index
    %25 = vector.load %arg1[%c0_23, %c17, %c0_24] : memref<1x296x4xf32, #tpu.memory_space<vmem>>, vector<1x224x4xf32>
    %26 = vector.shape_cast %25 : vector<1x224x4xf32> to vector<224x4xf32>
    %c4 = arith.constant 4 : index
    %c0_25 = arith.constant 0 : index
    %c0_26 = arith.constant 0 : index
    %27 = vector.load %arg2[%c4, %c0_25, %c0_26] : memref<9x4x128xf32, #tpu.memory_space<vmem>>, vector<1x4x128xf32>
    %28 = vector.shape_cast %27 : vector<1x4x128xf32> to vector<4x128xf32>
    %cst_27 = arith.constant dense<0.000000e+00> : vector<224x128xf32>
    %29 = tpu.matmul %26, %28, %cst_27 {dimension_numbers = #tpu.dot_dimension_numbers<[1], [0], [0], [1], [0, 0, 1, 1], [], []>} : vector<224x4xf32>, vector<4x128xf32>, vector<224x128xf32> -> vector<224x128xf32>
    %30 = arith.addf %24, %29 : vector<224x128xf32>
    %c0_28 = arith.constant 0 : index
    %c18 = arith.constant 18 : index
    %c0_29 = arith.constant 0 : index
    %31 = vector.load %arg1[%c0_28, %c18, %c0_29] : memref<1x296x4xf32, #tpu.memory_space<vmem>>, vector<1x224x4xf32>
    %32 = vector.shape_cast %31 : vector<1x224x4xf32> to vector<224x4xf32>
    %c5 = arith.constant 5 : index
    %c0_30 = arith.constant 0 : index
    %c0_31 = arith.constant 0 : index
    %33 = vector.load %arg2[%c5, %c0_30, %c0_31] : memref<9x4x128xf32, #tpu.memory_space<vmem>>, vector<1x4x128xf32>
    %34 = vector.shape_cast %33 : vector<1x4x128xf32> to vector<4x128xf32>
    %cst_32 = arith.constant dense<0.000000e+00> : vector<224x128xf32>
    %35 = tpu.matmul %32, %34, %cst_32 {dimension_numbers = #tpu.dot_dimension_numbers<[1], [0], [0], [1], [0, 0, 1, 1], [], []>} : vector<224x4xf32>, vector<4x128xf32>, vector<224x128xf32> -> vector<224x128xf32>
    %36 = arith.addf %30, %35 : vector<224x128xf32>
    %c0_33 = arith.constant 0 : index
    %c32 = arith.constant 32 : index
    %c0_34 = arith.constant 0 : index
    %37 = vector.load %arg1[%c0_33, %c32, %c0_34] : memref<1x296x4xf32, #tpu.memory_space<vmem>>, vector<1x224x4xf32>
    %38 = vector.shape_cast %37 : vector<1x224x4xf32> to vector<224x4xf32>
    %c6 = arith.constant 6 : index
    %c0_35 = arith.constant 0 : index
    %c0_36 = arith.constant 0 : index
    %39 = vector.load %arg2[%c6, %c0_35, %c0_36] : memref<9x4x128xf32, #tpu.memory_space<vmem>>, vector<1x4x128xf32>
    %40 = vector.shape_cast %39 : vector<1x4x128xf32> to vector<4x128xf32>
    %cst_37 = arith.constant dense<0.000000e+00> : vector<224x128xf32>
    %41 = tpu.matmul %38, %40, %cst_37 {dimension_numbers = #tpu.dot_dimension_numbers<[1], [0], [0], [1], [0, 0, 1, 1], [], []>} : vector<224x4xf32>, vector<4x128xf32>, vector<224x128xf32> -> vector<224x128xf32>
    %42 = arith.addf %36, %41 : vector<224x128xf32>
    %c0_38 = arith.constant 0 : index
    %c33 = arith.constant 33 : index
    %c0_39 = arith.constant 0 : index
    %43 = vector.load %arg1[%c0_38, %c33, %c0_39] : memref<1x296x4xf32, #tpu.memory_space<vmem>>, vector<1x224x4xf32>
    %44 = vector.shape_cast %43 : vector<1x224x4xf32> to vector<224x4xf32>
    %c7 = arith.constant 7 : index
    %c0_40 = arith.constant 0 : index
    %c0_41 = arith.constant 0 : index
    %45 = vector.load %arg2[%c7, %c0_40, %c0_41] : memref<9x4x128xf32, #tpu.memory_space<vmem>>, vector<1x4x128xf32>
    %46 = vector.shape_cast %45 : vector<1x4x128xf32> to vector<4x128xf32>
    %cst_42 = arith.constant dense<0.000000e+00> : vector<224x128xf32>
    %47 = tpu.matmul %44, %46, %cst_42 {dimension_numbers = #tpu.dot_dimension_numbers<[1], [0], [0], [1], [0, 0, 1, 1], [], []>} : vector<224x4xf32>, vector<4x128xf32>, vector<224x128xf32> -> vector<224x128xf32>
    %48 = arith.addf %42, %47 : vector<224x128xf32>
    %c0_43 = arith.constant 0 : index
    %c34 = arith.constant 34 : index
    %c0_44 = arith.constant 0 : index
    %49 = vector.load %arg1[%c0_43, %c34, %c0_44] : memref<1x296x4xf32, #tpu.memory_space<vmem>>, vector<1x224x4xf32>
    %50 = vector.shape_cast %49 : vector<1x224x4xf32> to vector<224x4xf32>
    %c8 = arith.constant 8 : index
    %c0_45 = arith.constant 0 : index
    %c0_46 = arith.constant 0 : index
    %51 = vector.load %arg2[%c8, %c0_45, %c0_46] : memref<9x4x128xf32, #tpu.memory_space<vmem>>, vector<1x4x128xf32>
    %52 = vector.shape_cast %51 : vector<1x4x128xf32> to vector<4x128xf32>
    %cst_47 = arith.constant dense<0.000000e+00> : vector<224x128xf32>
    %53 = tpu.matmul %50, %52, %cst_47 {dimension_numbers = #tpu.dot_dimension_numbers<[1], [0], [0], [1], [0, 0, 1, 1], [], []>} : vector<224x4xf32>, vector<4x128xf32>, vector<224x128xf32> -> vector<224x128xf32>
    %54 = arith.addf %48, %53 : vector<224x128xf32>
    %c0_48 = arith.constant 0 : index
    %c0_49 = arith.constant 0 : index
    %c0_50 = arith.constant 0 : index
    %55 = vector.load %arg3[%c0_48, %c0_49, %c0_50] : memref<1x224x128xf32, #tpu.memory_space<vmem>>, vector<1x224x128xf32>
    %56 = vector.shape_cast %55 : vector<1x224x128xf32> to vector<224x128xf32>
    %57 = vector.shape_cast %54 : vector<224x128xf32> to vector<1x224x128xf32>
    tpu.vector_store %arg3[%c0_48, %c0_49, %c0_50], %57 {strides = array<i32>} : memref<1x224x128xf32, #tpu.memory_space<vmem>>, vector<1x224x128xf32>,
    return
  }
  func.func @transform_0(%arg0: i32) -> (i32, i32, i32) {
    %c0_i32 = arith.constant 0 : i32
    %c0_i32_0 = arith.constant 0 : i32
    %c0_i32_1 = arith.constant 0 : i32
    return %arg0, %c0_i32, %c0_i32_0 : i32, i32, i32
  }
  func.func @transform_1(%arg0: i32) -> (i32, i32, i32) {
    %c0_i32 = arith.constant 0 : i32
    %c0_i32_0 = arith.constant 0 : i32
    %c0_i32_1 = arith.constant 0 : i32
    %c0_i32_2 = arith.constant 0 : i32
    return %c0_i32, %c0_i32_0, %c0_i32_1 : i32, i32, i32
  }
  func.func @transform_2(%arg0: i32) -> (i32, i32, i32) {
    %c0_i32 = arith.constant 0 : i32
    %c0_i32_0 = arith.constant 0 : i32
    %c0_i32_1 = arith.constant 0 : i32
    return %arg0, %c0_i32, %c0_i32_0 : i32, i32, i32
  }
}

</mosaic_0001>

<bundles_post_ra>
// kernel: tpu_custom_call.1
= control target key start
LH: loop header
LB: loop body
LE: loop exit
PB: predicated region body
PF: predicated region fallthrough
CT: control target
= control target key end

     0   :  { %7 = vsyncpa [#allocation3], 0  ;;  %s3873_s0 = inlined_call_operand.vmem [shape: f32[2,296,4], index: 0, kind: input, shape index: {}]   ;;  %s3874_s1 = inlined_call_operand.vmem [shape: f32[9,4,128], index: 1, kind: input, shape index: {}]   ;;  %s3875_s2 = inlined_call_operand.hbm [shape: f32[2,224,128], index: 2, kind: output, shape index: {}]  }
   0x1   :  { %9 = vsyncpa [#allocation3 + $0x1], 0  ;;  %s2812_s9 = smov 0   ;;  %s2814_s10 = smov 0  }
   0x2   :  { %s2816_s11 = smov 0   ;;  %s2818_s12 = smov 0  }
   0x3 LB: > { %s2833_s13 = sadd.s32 4294967295, %s2793_s12   ;;  %s2407_s14 = sadd.s32 4294967294, %s2793_s12   ;;  %s2793_s12 = sphi %s2818_s12, %s3981_s12   ;;  %s2789_s11 = sphi %s2816_s11, %s3980_s11   ;;  %s2785_s10 = sphi %s2814_s10, %s3979_s10   ;;  %s2781_s9 = sphi %s2812_s9, %s3978_s9  }
   0x4   : > { %s2837_s15 = sadd.s32 1, %s2793_s12   ;;  %s69_s16 = sadd.s32 1, %s2789_s11 }
   0x5   : > { %s66_s17 = ssub.s32 %s2793_s12, %s2837_s15  ;;  %p79_p0 = scmp.ne.s32.totalorder %s2789_s11, %s2785_s10 }
   0x6   : > { %p67_p1 = scmp.eq.s32.totalorder %s66_s17, 0  ;;  %p80_p2 = scmp.eq.s32.totalorder %s2833_s13, 1 }
   0x7   : > { %p85_p3 = scmp.ne.s32.totalorder %s2785_s10, %s2781_s9  ;;  %p86_p4 = scmp.eq.s32.totalorder %s2407_s14, 1 }
   0x8   : > { %s2848_s18 = scalar_select %p67_p1, %s2789_s11, %s69_s16  }
   0x9   : > { %p2850_p5 = por %p80_p2, %p79_p0  ;;  %p2854_p6 = por %p86_p4, %p85_p3 }
   0xa   : > { %p2410_p7 = scmp.ge.s32.totalorder %s2793_s12, 1  ;;  %p115_p8 = scmp.lt.s32.totalorder %s2793_s12, 3 }
   0xc   : > { %p116_p9 = pnand %p2410_p7, %p115_p8 }
   0xe   : > { %119 = sbr.rel (%p116_p9) target bundleno = 665 (0x299), region = 28 }
  0x13   : > { %v2412_v0 = vld [vmem:[%s3874_s1 + $0x4] sm:$0xf]  ;;  %vm286_vm0 = vcmask 1043456   ;;  %p137_p10 = scmp.lt.s32.totalorder %s2833_s13, 1  ;;  %v2471_v1 = vld [vmem:[%s3874_s1 + $0x8] sm:$0xf] }
  0x14   : > { %2684 = vmatpush.msk.msra.mxu1 %vm286_vm0, %v2412_v0  ;;  %2685 = vmatpush.msk.msra.mxu2 %vm286_vm0, %v2412_v0  ;;  %v2501_v2 = vld [vmem:[%s3874_s1 + $0xc] sm:$0xf]  ;;  %v170_v3 = vld [vmem:[%s3874_s1] sm:$0xf]  ;;  %v2531_v4 = vld [vmem:[%s3874_s1 + $0x10] sm:$0xf] }
  0x15   : > { %s138_s29 = scalar_select %p137_p10, %s2833_s13, 1  ;;  %2686 = vmatpush.msk.msra.mxu3 %vm286_vm0, %v2412_v0  ;;  %2413 = vmatpush.msk.msra.mxu0 %vm286_vm0, %v2412_v0  ;;  %vm201_vm1 = vcmask 31744   ;;  %v2591_v21 = vld [vmem:[%s3874_s1 + $0x18] sm:$0xf]  ;;  %v2621_v22 = vld [vmem:[%s3874_s1 + $0x1c] sm:$0xf] }
  0x16   : > { %2472 = vmatpush.msk.msrb.mxu2 %vm286_vm0, %v2471_v1  ;;  %2442 = vmatpush.msk.msrb.mxu1 %vm286_vm0, %v170_v3  ;;  %v2561_v23 = vld [vmem:[%s3874_s1 + $0x14] sm:$0xf]  ;;  %v2651_v28 = vld [vmem:[%s3874_s1 + $0x20] sm:$0xf]  ;;  %s134_s25 = sand.u32 1, %s2785_s10   ;;  %s2689_s28 = smul.u32 224, %s2833_s13 }
  0x17   : > { %2502 = vmatpush.msk.msrb.mxu3 %vm286_vm0, %v2501_v2  ;;  %s2688_s4 = smul.u32 296, %s138_s29  ;;  %2532 = vmatpush.msk.msrb.mxu0 %vm286_vm0, %v2531_v4  ;;  %s2330_s13 = scalar_lea.sflag [#allocation3], %s134_s25 }
  0x18   : > { %s2687_s26 = smul.u32 224, %s134_s25  ;;  %s2341_s3 = scalar_lea.hbm %s3875_s2, %s2689_s28 }
  0x19   : > { %s2888_s7 = scalar_lea.vmem %s3873_s0, %s2688_s4  ;;  %s2344_s5 = sshll.u32 %s2341_s3, 4  ;;  %s2345_s5 = int_to_ptr.hbm [resolvable:$true] %s2344_s5 }
  0x1a   : > { %v2891_v5 = vld [vmem:[%s2888_s7 + $0x39] sm:$0xff]  ;;  %v2894_v6 = vld [vmem:[%s2888_s7 + $0x71] sm:$0xff]  ;;  %v2897_v7 = vld [vmem:[%s2888_s7 + $0xa9] sm:$0xff]  ;;  %s3705_s27 = scalar_lea.vmem [#allocation2], %s2687_s26  ;;  %s2745_s6 = sshra.s32 %s2345_s5, 4  ;;  %s2746_s6 = int_to_ptr.hbm [resolvable:$true] %s2745_s6 }
  0x1b   : > { %2421 = vmatmul.msk.f32.vlgmr.msra.gmra.mxu1 %vm201_vm1, %v2891_v5  ;;  %2428 = vmatmul.msk.f32.vlgmr.msra.gmra.mxu2 %vm201_vm1, %v2894_v6  ;;  %v171_v8 = vld [vmem:[%s2888_s7 + $0x1] sm:$0xff]  ;;  %v2911_v10 = vld [vmem:[%s2888_s7 + $0x79] sm:$0xff]  ;;  %v2914_v11 = vld [vmem:[%s2888_s7 + $0xb1] sm:$0xff]  ;;  %s2342_s4 = sshll.u32 %s3705_s27, 4  ;;  %s2751_s16 = scalar_lea.hbm %s3875_s2, 448  ;;  %s2343_s4 = int_to_ptr.vmem [resolvable:$true] %s2342_s4 }
  0x1c   : > { %2435 = vmatmul.msk.f32.vlgmr.msra.gmra.mxu3 %vm201_vm1, %v2897_v7  ;;  %2414 = vmatmul.msk.f32.vlgmr.msra.gmra.mxu0 %vm201_vm1, %v171_v8  ;;  %v2908_v9 = vld [vmem:[%s2888_s7 + $0x41] sm:$0xff]  ;;  %v172_v12 = vld [vmem:[%s2888_s7 + $0x9] sm:$0xff]  ;;  %v2931_v15 = vld [vmem:[%s2888_s7 + $0xb9] sm:$0xff]  ;;  %p2752_p0 = scmp.lt.s32.totalorder %s2746_s6, %s3875_s2 }
  0x1d   : > { %v2925_v13 = vld [vmem:[%s2888_s7 + $0x49] sm:$0xff]  ;;  %v2928_v14 = vld [vmem:[%s2888_s7 + $0x81] sm:$0xff]  ;;  %v173_v16 = vld [vmem:[%s2888_s7 + $0x11] sm:$0xff]  ;;  %2592 = vmatpush.msk.msra.mxu2 %vm286_vm0, %v2591_v21  ;;  %2622 = vmatpush.msk.msra.mxu3 %vm286_vm0, %v2621_v22 }
  0x1e   : > { %v2942_v17 = vld [vmem:[%s2888_s7 + $0x51] sm:$0xff]  ;;  %v2945_v18 = vld [vmem:[%s2888_s7 + $0x89] sm:$0xff]  ;;  %v2948_v19 = vld [vmem:[%s2888_s7 + $0xc1] sm:$0xff]  ;;  %2562 = vmatpush.msk.msra.mxu1 %vm286_vm0, %v2561_v23  ;;  %2652 = vmatpush.msk.msra.mxu0 %vm286_vm0, %v2651_v28 }
  0x1f   : > { %v174_v20 = vld [vmem:[%s2888_s7 + $0x19] sm:$0xff]  ;;  %v2974_v25 = vld [vmem:[%s2888_s7 + $0x91] sm:$0xff]  ;;  %v2977_v26 = vld [vmem:[%s2888_s7 + $0xc9] sm:$0xff] }
  0x20   : > { %v2971_v24 = vld [vmem:[%s2888_s7 + $0x59] sm:$0xff]  ;;  %v2980_v27 = vld [vmem:[%s2888_s7 + $0x21] sm:$0xff]  ;;  %v3001_v31 = vld [vmem:[%s2888_s7 + $0xd1] sm:$0xff] }
  0x21   : > { %3904 = vst [vmem:[#allocation5_spill] sm:$0xff] %v2971_v24  ;;  %v2995_v29 = vld [vmem:[%s2888_s7 + $0x61] sm:$0xff]  ;;  %v2998_v30 = vld [vmem:[%s2888_s7 + $0x99] sm:$0xff]  ;;  %v3004_v32 = vld [vmem:[%s2888_s7 + $0x29] sm:$0xff] }
  0x22   : > { %3905 = vst [vmem:[#allocation6_spill] sm:$0xff] %v2995_v29  ;;  %v3015_v33 = vld [vmem:[%s2888_s7 + $0x69] sm:$0xff]  ;;  %v3018_v34 = vld [vmem:[%s2888_s7 + $0xa1] sm:$0xff]  ;;  %v3021_v35 = vld [vmem:[%s2888_s7 + $0xd9] sm:$0xff] }
  0x23   : > { %2422 = vmatmul.msk.f32.gmra.mxu1 %vm201_vm1, %v2908_v9  ;;  %2429 = vmatmul.msk.f32.gmra.mxu2 %vm201_vm1, %v2911_v10  ;;  %v3024_v36 = vld [vmem:[%s2888_s7 + $0x31] sm:$0xff]  ;;  %v142_v37 = vld [vmem:[%s2888_s7] sm:$0xff]  ;;  %v143_v40 = vld [vmem:[%s2888_s7 + $0x8] sm:$0xff] }
  0x24   : > { %2436 = vmatmul.msk.f32.gmra.mxu3 %vm201_vm1, %v2914_v11  ;;  %2415 = vmatmul.msk.f32.gmra.mxu0 %vm201_vm1, %v172_v12  ;;  %v579_v38 = vld [vmem:[%s2888_s7 + $0x2] sm:$0xff]  ;;  %v825_v39 = vld [vmem:[%s2888_s7 + $0x10] sm:$0xff]  ;;  %v826_v42 = vld [vmem:[%s2888_s7 + $0x18] sm:$0xff] }
  0x25   : > { %v580_v41 = vld [vmem:[%s2888_s7 + $0xa] sm:$0xff]  ;;  %v3049_v43 = vld [vmem:[%s2888_s7 + $0x12] sm:$0xff]  ;;  %v3052_v44 = vld [vmem:[%s2888_s7 + $0x20] sm:$0xff] }
  0x26   : > { %v3062_v45 = vld [vmem:[%s2888_s7 + $0x1a] sm:$0xff]  ;;  %v3065_v46 = vld [vmem:[%s2888_s7 + $0x28] sm:$0xff]  ;;  %v3078_v48 = vld [vmem:[%s2888_s7 + $0x30] sm:$0xff] }
  0x27   : > { %v3075_v47 = vld [vmem:[%s2888_s7 + $0x22] sm:$0xff]  ;;  %v3089_v49 = vld [vmem:[%s2888_s7 + $0x2a] sm:$0xff]  ;;  %v3092_v50 = vld [vmem:[%s2888_s7 + $0x38] sm:$0xff] }
  0x28   : > { %v3103_v51 = vld [vmem:[%s2888_s7 + $0x32] sm:$0xff]  ;;  %v3106_v52 = vld [vmem:[%s2888_s7 + $0x40] sm:$0xff]  ;;  %v3120_v54 = vld [vmem:[%s2888_s7 + $0x48] sm:$0xff] }
  0x29   : > { %v3117_v53 = vld [vmem:[%s2888_s7 + $0x3a] sm:$0xff]  ;;  %v3131_v55 = vld [vmem:[%s2888_s7 + $0x42] sm:$0xff]  ;;  %v3134_v56 = vld [vmem:[%s2888_s7 + $0x50] sm:$0xff] }
  0x2a   : > { %v3147_v58 = vld [vmem:[%s2888_s7 + $0x4a] sm:$0xff]  ;;  %v3150_v59 = vld [vmem:[%s2888_s7 + $0x58] sm:$0xff]  ;;  %v3172_v1 = vld [vmem:[%s2888_s7 + $0x60] sm:$0xff] }
  0x2b   : > { %2423 = vmatmul.msk.f32.gmra.mxu1 %vm201_vm1, %v2925_v13  ;;  %2430 = vmatmul.msk.f32.gmra.mxu2 %vm201_vm1, %v2928_v14  ;;  %3906 = vst [vmem:[#allocation7_spill] sm:$0xff] %v3150_v59  ;;  %v3169_v0 = vld [vmem:[%s2888_s7 + $0x52] sm:$0xff]  ;;  %v3191_v12 = vld [vmem:[%s2888_s7 + $0x5a] sm:$0xff]  ;;  %v3213_v28 = vld [vmem:[%s2888_s7 + $0x62] sm:$0xff] }
  0x2c   : > { %2437 = vmatmul.msk.f32.gmra.mxu3 %vm201_vm1, %v2931_v15  ;;  %2416 = vmatmul.msk.f32.gmra.mxu0 %vm201_vm1, %v173_v16  ;;  %3908 = vst [vmem:[#allocation9_spill] sm:$0xff] %v3169_v0 }
  0x2d   : > { %3909 = vst [vmem:[#allocation10_spill] sm:$0xff] %v3172_v1 }
  0x2e   : > { %3911 = vst [vmem:[#allocation12_spill] sm:$0xff] %v3191_v12 }
  0x2f   : > { %3914 = vst [vmem:[#allocation15_spill] sm:$0xff] %v3213_v28 }
  0x33   : > { %2424 = vmatmul.msk.f32.gmra.mxu1 %vm201_vm1, %v2942_v17  ;;  %2431 = vmatmul.msk.f32.gmra.mxu2 %vm201_vm1, %v2945_v18 }
  0x34   : > { %2438 = vmatmul.msk.f32.gmra.mxu3 %vm201_vm1, %v2948_v19  ;;  %2417 = vmatmul.msk.f32.gmra.mxu0 %vm201_vm1, %v174_v20 }
  0x3b   : > { %2425 = vmatmul.msk.f32.gmra.mxu1 %vm201_vm1, %v2971_v24  ;;  %2432 = vmatmul.msk.f32.gmra.mxu2 %vm201_vm1, %v2974_v25 }
  0x3c   : > { %2439 = vmatmul.msk.f32.gmra.mxu3 %vm201_vm1, %v2977_v26  ;;  %2418 = vmatmul.msk.f32.gmra.mxu0 %vm201_vm1, %v2980_v27 }
  0x43   : > { %2426 = vmatmul.msk.f32.gmra.mxu1 %vm201_vm1, %v2995_v29  ;;  %2433 = vmatmul.msk.f32.gmra.mxu2 %vm201_vm1, %v2998_v30 }
  0x44   : > { %2440 = vmatmul.msk.f32.gmra.mxu3 %vm201_vm1, %v3001_v31  ;;  %2419 = vmatmul.msk.f32.gmra.mxu0 %vm201_vm1, %v3004_v32 }
  0x4b   : > { %2427 = vmatmul.msk.f32.gmra.mxu1 %vm201_vm1, %v3015_v33  ;;  %2434 = vmatmul.msk.f32.gmra.mxu2 %vm201_vm1, %v3018_v34 }
  0x4c   : > { %2441 = vmatmul.msk.f32.gmra.mxu3 %vm201_vm1, %v3021_v35  ;;  %2420 = vmatmul.msk.f32.gmra.mxu0 %vm201_vm1, %v3024_v36 }
  0x53   : > { %2443 = vmatmul.msk.f32.vlgmr.msrb.gmra.mxu1 %vm201_vm1, %v142_v37  ;;  %2473 = vmatmul.msk.f32.vlgmr.msrb.gmra.mxu2 %vm201_vm1, %v579_v38  ;;  %v3216_v37 = vld [vmem:[%s2888_s7 + $0x70] sm:$0xff] }
  0x54   : > { %2503 = vmatmul.msk.f32.vlgmr.msrb.gmra.mxu3 %vm201_vm1, %v825_v39  ;;  %2533 = vmatmul.msk.f32.vlgmr.msrb.gmra.mxu0 %vm201_vm1, %v173_v16  ;;  %v3194_v16 = vld [vmem:[%s2888_s7 + $0x68] sm:$0xff]  ;;  %3915 = vst [vmem:[#allocation16_spill] sm:$0xff] %v3216_v37 }
  0x55   : > { %3912 = vst [vmem:[#allocation13_spill] sm:$0xff] %v3194_v16 }
  0x5b   : > { %2444 = vmatmul.msk.f32.gmra.mxu1 %vm201_vm1, %v143_v40  ;;  %2474 = vmatmul.msk.f32.gmra.mxu2 %vm201_vm1, %v580_v41  ;;  %v3235_v41 = vld [vmem:[%s2888_s7 + $0x6a] sm:$0xff] }
  0x5c   : > { %2504 = vmatmul.msk.f32.gmra.mxu3 %vm201_vm1, %v826_v42  ;;  %2534 = vmatmul.msk.f32.gmra.mxu0 %vm201_vm1, %v174_v20  ;;  %3917 = vst [vmem:[#allocation18_spill] sm:$0xff] %v3235_v41 }
  0x63   : > { %2445 = vmatmul.msk.f32.gmra.mxu1 %vm201_vm1, %v825_v39  ;;  %2475 = vmatmul.msk.f32.gmra.mxu2 %vm201_vm1, %v3049_v43 }
  0x64   : > { %2505 = vmatmul.msk.f32.gmra.mxu3 %vm201_vm1, %v3052_v44  ;;  %2535 = vmatmul.msk.f32.gmra.mxu0 %vm201_vm1, %v2980_v27 }
  0x6b   : > { %2446 = vmatmul.msk.f32.gmra.mxu1 %vm201_vm1, %v826_v42  ;;  %2476 = vmatmul.msk.f32.gmra.mxu2 %vm201_vm1, %v3062_v45  ;;  %v3238_v42 = vld [vmem:[%s2888_s7 + $0x78] sm:$0xff] }
  0x6c   : > { %2506 = vmatmul.msk.f32.gmra.mxu3 %vm201_vm1, %v3065_v46  ;;  %2536 = vmatmul.msk.f32.gmra.mxu0 %vm201_vm1, %v3004_v32  ;;  %3918 = vst [vmem:[#allocation19_spill] sm:$0xff] %v3238_v42 }
  0x73   : > { %2447 = vmatmul.msk.f32.gmra.mxu1 %vm201_vm1, %v3052_v44  ;;  %2477 = vmatmul.msk.f32.gmra.mxu2 %vm201_vm1, %v3075_v47 }
  0x74   : > { %2507 = vmatmul.msk.f32.gmra.mxu3 %vm201_vm1, %v3078_v48  ;;  %2537 = vmatmul.msk.f32.gmra.mxu0 %vm201_vm1, %v3024_v36 }
  0x7b   : > { %2448 = vmatmul.msk.f32.gmra.mxu1 %vm201_vm1, %v3065_v46  ;;  %2478 = vmatmul.msk.f32.gmra.mxu2 %vm201_vm1, %v3089_v49 }
  0x7c   : > { %2508 = vmatmul.msk.f32.gmra.mxu3 %vm201_vm1, %v3092_v50  ;;  %2538 = vmatmul.msk.f32.gmra.mxu0 %vm201_vm1, %v2891_v5 }
  0x83   : > { %2449 = vmatmul.msk.f32.gmra.mxu1 %vm201_vm1, %v3078_v48  ;;  %2479 = vmatmul.msk.f32.gmra.mxu2 %vm201_vm1, %v3103_v51 }
  0x84   : > { %2509 = vmatmul.msk.f32.gmra.mxu3 %vm201_vm1, %v3106_v52  ;;  %2539 = vmatmul.msk.f32.gmra.mxu0 %vm201_vm1, %v2908_v9 }
  0x8b   : > { %2450 = vmatmul.msk.f32.gmra.mxu1 %vm201_vm1, %v3092_v50  ;;  %2480 = vmatmul.msk.f32.gmra.mxu2 %vm201_vm1, %v3117_v53 }
  0x8c   : > { %2510 = vmatmul.msk.f32.gmra.mxu3 %vm201_vm1, %v3120_v54  ;;  %2540 = vmatmul.msk.f32.gmra.mxu0 %vm201_vm1, %v2925_v13 }
  0x93   : > { %2451 = vmatmul.msk.f32.gmra.mxu1 %vm201_vm1, %v3106_v52  ;;  %2481 = vmatmul.msk.f32.gmra.mxu2 %vm201_vm1, %v3131_v55 }
  0x94   : > { %2511 = vmatmul.msk.f32.gmra.mxu3 %vm201_vm1, %v3134_v56  ;;  %2541 = vmatmul.msk.f32.gmra.mxu0 %vm201_vm1, %v2942_v17 }
  0x98   : > { %v3144_v57 = vpop.f32.mrf.mxu1 }
  0x99   : > { %v3152_v60 = vpop.f32.mrf.mxu0 }
  0x9b   : > { %2452 = vmatmul.msk.f32.gmra.mxu1 %vm201_vm1, %v3120_v54  ;;  %2482 = vmatmul.msk.f32.gmra.mxu2 %vm201_vm1, %v3147_v58 }
  0x9c   : > { %2512 = vmatmul.msk.f32.gmra.mxu3 %vm201_vm1, %v3150_v59  ;;  %2542 = vmatmul.msk.f32.gmra.mxu0 %vm201_vm1, %v2971_v24 }
  0x9e   : > { %v3162_v61 = vpop.f32.mrf.mxu2 }
  0x9f   : > { %v3164_v62 = vpop.f32.mrf.mxu3 }
  0xa0   : > { %3907 = vst [vmem:[#allocation8_spill] sm:$0xff] %v3164_v62  ;;  %v3166_v63 = vpop.f32.mrf.mxu1  ;;  %v3257_v62 = vld [vmem:[%s2888_s7 + $0x72] sm:$0xff] }
  0xa1   : > { %v3174_v2 = vpop.f32.mrf.mxu0  ;;  %3921 = vst [vmem:[#allocation22_spill] sm:$0xff] %v3257_v62 }
  0xa3   : > { %2453 = vmatmul.msk.f32.gmra.mxu1 %vm201_vm1, %v3134_v56  ;;  %2483 = vmatmul.msk.f32.gmra.mxu2 %vm201_vm1, %v3169_v0 }
  0xa4   : > { %2513 = vmatmul.msk.f32.gmra.mxu3 %vm201_vm1, %v3172_v1  ;;  %2543 = vmatmul.msk.f32.gmra.mxu0 %vm201_vm1, %v2995_v29  ;;  %v3279_v29 = vld [vmem:[%s2888_s7 + $0x7a] sm:$0xff] }
  0xa5   : > { %3925 = vst [vmem:[#allocation26_spill] sm:$0xff] %v3279_v29 }
  0xa6   : > { %v3184_v3 = vpop.f32.mrf.mxu2 }
  0xa7   : > { %v3186_v4 = vpop.f32.mrf.mxu3 }
  0xa8   : > { %3910 = vst [vmem:[#allocation11_spill] sm:$0xff] %v3186_v4  ;;  %v3188_v8 = vpop.f32.mrf.mxu1 }
  0xa9   : > { %v3196_v20 = vpop.f32.mrf.mxu0 }
  0xab   : > { %2454 = vmatmul.msk.f32.gmra.mxu1 %vm201_vm1, %v3150_v59  ;;  %2484 = vmatmul.msk.f32.gmra.mxu2 %vm201_vm1, %v3191_v12  ;;  %v3302_v12 = vld [vmem:[%s2888_s7 + $0x90] sm:$0xff] }
  0xac   : > { %2514 = vmatmul.msk.f32.gmra.mxu3 %vm201_vm1, %v3194_v16  ;;  %2544 = vmatmul.msk.f32.gmra.mxu0 %vm201_vm1, %v3015_v33  ;;  %v3314_v59 = vld [vmem:[%s2888_s7 + $0x8a] sm:$0xff] }
  0xae   : > { %v3206_v21 = vpop.f32.mrf.mxu2 }
  0xaf   : > { %v3208_v22 = vpop.f32.mrf.mxu3 }
  0xb0   : > { %3913 = vst [vmem:[#allocation14_spill] sm:$0xff] %v3208_v22  ;;  %v3210_v23 = vpop.f32.mrf.mxu1 }
  0xb1   : > { %v3218_v38 = vpop.f32.mrf.mxu0 }
  0xb3   : > { %2455 = vmatmul.msk.f32.gmra.mxu1 %vm201_vm1, %v3172_v1  ;;  %2485 = vmatmul.msk.f32.gmra.mxu2 %vm201_vm1, %v3213_v28 }
  0xb4   : > { %2515 = vmatmul.msk.f32.gmra.mxu3 %vm201_vm1, %v3216_v37  ;;  %2545 = vmatmul.msk.f32.gmra.mxu0 %vm201_vm1, %v2894_v6 }
  0xb6   : > { %v3228_v33 = vpop.f32.mrf.mxu2 }
  0xb7   : > { %v3230_v39 = vpop.f32.mrf.mxu3 }
  0xb8   : > { %3916 = vst [vmem:[#allocation17_spill] sm:$0xff] %v3230_v39  ;;  %v3232_v40 = vpop.f32.mrf.mxu1 }
  0xb9   : > { %v3240_v22 = vpop.f32.mrf.mxu0 }
  0xbb   : > { %2456 = vmatmul.msk.f32.gmra.mxu1 %vm201_vm1, %v3194_v16  ;;  %2486 = vmatmul.msk.f32.gmra.mxu2 %vm201_vm1, %v3235_v41  ;;  %v3260_v16 = vld [vmem:[%s2888_s7 + $0x80] sm:$0xff] }
  0xbc   : > { %2516 = vmatmul.msk.f32.gmra.mxu3 %vm201_vm1, %v3238_v42  ;;  %2546 = vmatmul.msk.f32.gmra.mxu0 %vm201_vm1, %v2911_v10  ;;  %3922 = vst [vmem:[#allocation23_spill] sm:$0xff] %v3260_v16 }
  0xbe   : > { %v3250_v6 = vpop.f32.mrf.mxu2 }
  0xbf   : > { %3919 = vst [vmem:[#allocation20_spill] sm:$0xff] %v3250_v6  ;;  %v3252_v39 = vpop.f32.mrf.mxu3  ;;  %v3317_v6 = vld [vmem:[%s2888_s7 + $0x98] sm:$0xff] }
  0xc0   : > { %3920 = vst [vmem:[#allocation21_spill] sm:$0xff] %v3252_v39  ;;  %v3254_v4 = vpop.f32.mrf.mxu1 }
  0xc1   : > { %v3262_v28 = vpop.f32.mrf.mxu0 }
  0xc3   : > { %2457 = vmatmul.msk.f32.gmra.mxu1 %vm201_vm1, %v3216_v37  ;;  %2487 = vmatmul.msk.f32.gmra.mxu2 %vm201_vm1, %v3257_v62  ;;  %v3282_v37 = vld [vmem:[%s2888_s7 + $0x88] sm:$0xff] }
  0xc4   : > { %2517 = vmatmul.msk.f32.gmra.mxu3 %vm201_vm1, %v3260_v16  ;;  %2547 = vmatmul.msk.f32.gmra.mxu0 %vm201_vm1, %v2928_v14 }
  0xc6   : > { %v3272_v10 = vpop.f32.mrf.mxu2 }
  0xc7   : > { %3923 = vst [vmem:[#allocation24_spill] sm:$0xff] %v3272_v10  ;;  %v3274_v39 = vpop.f32.mrf.mxu3  ;;  %v3299_v10 = vld [vmem:[%s2888_s7 + $0x82] sm:$0xff] }
  0xc8   : > { %3924 = vst [vmem:[#allocation25_spill] sm:$0xff] %v3274_v39  ;;  %v3276_v41 = vpop.f32.mrf.mxu1 }
  0xc9   : > { %v3284_v1 = vpop.f32.mrf.mxu0  ;;  %3928 = vst [vmem:[#allocation29_spill] sm:$0xff] %v3299_v10 }
  0xcb   : > { %2458 = vmatmul.msk.f32.gmra.mxu1 %vm201_vm1, %v3238_v42  ;;  %2488 = vmatmul.msk.f32.gmra.mxu2 %vm201_vm1, %v3279_v29 }
  0xcc   : > { %2518 = vmatmul.msk.f32.gmra.mxu3 %vm201_vm1, %v3282_v37  ;;  %2548 = vmatmul.msk.f32.gmra.mxu0 %vm201_vm1, %v2945_v18 }
  0xce   : > { %v3294_v14 = vpop.f32.mrf.mxu2 }
  0xcf   : > { %3926 = vst [vmem:[#allocation27_spill] sm:$0xff] %v3294_v14  ;;  %v3296_v39 = vpop.f32.mrf.mxu3 }
  0xd0   : > { %3927 = vst [vmem:[#allocation28_spill] sm:$0xff] %v3296_v39  ;;  %v495_v62 = vpop.f32.mrf.mxu1 }
  0xd1   : > { %v1205_v42 = vpop.f32.mrf.mxu0  ;;  %v496_v18 = vadd.f32 %v495_v62, %v3152_v60 }
  0xd3   : > { %2459 = vmatmul.msk.f32.gmra.mxu1 %vm201_vm1, %v3260_v16  ;;  %2489 = vmatmul.msk.f32.gmra.mxu2 %vm201_vm1, %v3299_v10 }
  0xd4   : > { %2519 = vmatmul.msk.f32.gmra.mxu3 %vm201_vm1, %v3302_v12  ;;  %2549 = vmatmul.msk.f32.gmra.mxu0 %vm201_vm1, %v2974_v25 }
  0xd6   : > { %v713_v39 = vpop.f32.mrf.mxu2 }
  0xd7   : > { %v797_v29 = vadd.f32 %v713_v39, %v496_v18  ;;  %v959_v14 = vpop.f32.mrf.mxu3  ;;  %v3331_v39 = vld [vmem:[%s2888_s7 + $0x92] sm:$0xff] }
  0xd8   : > { %v498_v24 = vpop.f32.mrf.mxu1 }
  0xd9   : > { %v1043_v16 = vadd.f32 %v959_v14, %v797_v29  ;;  %v1208_v10 = vpop.f32.mrf.mxu0  ;;  %v499_v25 = vadd.f32 %v498_v24, %v3174_v2  ;;  %v3334_v14 = vld [vmem:[%s2888_s7 + $0xa0] sm:$0xff] }
  0xdb   : > { %v3319_v0 = vadd.f32 %v1205_v42, %v1043_v16  ;;  %2460 = vmatmul.msk.f32.gmra.mxu1 %vm201_vm1, %v3282_v37  ;;  %2490 = vmatmul.msk.f32.gmra.mxu2 %vm201_vm1, %v3314_v59 }
  0xdc   : > { %2520 = vmatmul.msk.f32.gmra.mxu3 %vm201_vm1, %v3317_v6  ;;  %2550 = vmatmul.msk.f32.gmra.mxu0 %vm201_vm1, %v2998_v30 }
  0xdd   : > { %3929 = vst [vmem:[#allocation30_spill] sm:$0xff] %v3319_v0 }
  0xde   : > { %v716_v29 = vpop.f32.mrf.mxu2 }
  0xdf   : > { %v798_v60 = vadd.f32 %v716_v29, %v499_v25  ;;  %v962_v62 = vpop.f32.mrf.mxu3  ;;  %v3348_v29 = vld [vmem:[%s2888_s7 + $0x9a] sm:$0xff] }
  0xe0   : > { %v501_v16 = vpop.f32.mrf.mxu1 }
  0xe1   : > { %v1044_v42 = vadd.f32 %v962_v62, %v798_v60  ;;  %v1211_v18 = vpop.f32.mrf.mxu0  ;;  %v502_v24 = vadd.f32 %v501_v16, %v3196_v20  ;;  %v3351_v62 = vld [vmem:[%s2888_s7 + $0xa8] sm:$0xff] }
  0xe3   : > { %v3336_v0 = vadd.f32 %v1208_v10, %v1044_v42  ;;  %2461 = vmatmul.msk.f32.gmra.mxu1 %vm201_vm1, %v3302_v12  ;;  %2491 = vmatmul.msk.f32.gmra.mxu2 %vm201_vm1, %v3331_v39 }
  0xe4   : > { %2521 = vmatmul.msk.f32.gmra.mxu3 %vm201_vm1, %v3334_v14  ;;  %2551 = vmatmul.msk.f32.gmra.mxu0 %vm201_vm1, %v3018_v34 }
  0xe5   : > { %3930 = vst [vmem:[#allocation31_spill] sm:$0xff] %v3336_v0 }
  0xe6   : > { %v719_v30 = vpop.f32.mrf.mxu2 }
  0xe7   : > { %v799_v2 = vadd.f32 %v719_v30, %v502_v24  ;;  %v965_v25 = vpop.f32.mrf.mxu3  ;;  %v3365_v30 = vld [vmem:[%s2888_s7 + $0xa2] sm:$0xff] }
  0xe8   : > { %v504_v10 = vpop.f32.mrf.mxu1 }
  0xe9   : > { %v1045_v60 = vadd.f32 %v965_v25, %v799_v2  ;;  %v1214_v42 = vpop.f32.mrf.mxu0  ;;  %v505_v34 = vadd.f32 %v504_v10, %v3218_v38  ;;  %v3368_v25 = vld [vmem:[%s2888_s7 + $0xb0] sm:$0xff] }
  0xeb   : > { %v3353_v0 = vadd.f32 %v1211_v18, %v1045_v60  ;;  %2462 = vmatmul.msk.f32.gmra.mxu1 %vm201_vm1, %v3317_v6  ;;  %2492 = vmatmul.msk.f32.gmra.mxu2 %vm201_vm1, %v3348_v29 }
  0xec   : > { %2522 = vmatmul.msk.f32.gmra.mxu3 %vm201_vm1, %v3351_v62  ;;  %2552 = vmatmul.msk.f32.gmra.mxu0 %vm201_vm1, %v2897_v7 }
  0xed   : > { %3931 = vst [vmem:[#allocation32_spill] sm:$0xff] %v3353_v0 }
  0xee   : > { %v722_v20 = vpop.f32.mrf.mxu2 }
  0xef   : > { %v800_v16 = vadd.f32 %v722_v20, %v505_v34  ;;  %v968_v24 = vpop.f32.mrf.mxu3  ;;  %v3382_v20 = vld [vmem:[%s2888_s7 + $0xaa] sm:$0xff] }
  0xf0   : > { %v507_v18 = vpop.f32.mrf.mxu1 }
  0xf1   : > { %v1046_v2 = vadd.f32 %v968_v24, %v800_v16  ;;  %v1217_v60 = vpop.f32.mrf.mxu0  ;;  %v508_v7 = vadd.f32 %v507_v18, %v3240_v22  ;;  %v3385_v24 = vld [vmem:[%s2888_s7 + $0xb8] sm:$0xff] }
  0xf3   : > { %v3370_v0 = vadd.f32 %v1214_v42, %v1046_v2  ;;  %2463 = vmatmul.msk.f32.gmra.mxu1 %vm201_vm1, %v3334_v14  ;;  %2493 = vmatmul.msk.f32.gmra.mxu2 %vm201_vm1, %v3365_v30 }
  0xf4   : > { %2523 = vmatmul.msk.f32.gmra.mxu3 %vm201_vm1, %v3368_v25  ;;  %2553 = vmatmul.msk.f32.gmra.mxu0 %vm201_vm1, %v2914_v11 }
  0xf5   : > { %3932 = vst [vmem:[#allocation33_spill] sm:$0xff] %v3370_v0 }
  0xf6   : > { %v725_v38 = vpop.f32.mrf.mxu2 }
  0xf7   : > { %v801_v10 = vadd.f32 %v725_v38, %v508_v7  ;;  %v971_v34 = vpop.f32.mrf.mxu3  ;;  %v3399_v38 = vld [vmem:[%s2888_s7 + $0xb2] sm:$0xff] }
  0xf8   : > { %v510_v42 = vpop.f32.mrf.mxu1 }
  0xf9   : > { %v1047_v16 = vadd.f32 %v971_v34, %v801_v10  ;;  %v1220_v2 = vpop.f32.mrf.mxu0  ;;  %v511_v11 = vadd.f32 %v510_v42, %v3262_v28  ;;  %v3402_v34 = vld [vmem:[%s2888_s7 + $0xc0] sm:$0xff] }
  0xfb   : > { %v3387_v0 = vadd.f32 %v1217_v60, %v1047_v16  ;;  %2464 = vmatmul.msk.f32.gmra.mxu1 %vm201_vm1, %v3351_v62  ;;  %2494 = vmatmul.msk.f32.gmra.mxu2 %vm201_vm1, %v3382_v20 }
  0xfc   : > { %2524 = vmatmul.msk.f32.gmra.mxu3 %vm201_vm1, %v3385_v24  ;;  %2554 = vmatmul.msk.f32.gmra.mxu0 %vm201_vm1, %v2931_v15 }
  0xfd   : > { %3933 = vst [vmem:[#allocation34_spill] sm:$0xff] %v3387_v0 }
  0xfe   : > { %v728_v22 = vpop.f32.mrf.mxu2 }
  0xff   : > { %v802_v18 = vadd.f32 %v728_v22, %v511_v11  ;;  %v974_v7 = vpop.f32.mrf.mxu3  ;;  %v3416_v22 = vld [vmem:[%s2888_s7 + $0xba] sm:$0xff] }
 0x100   : > { %v513_v60 = vpop.f32.mrf.mxu1 }
 0x101   : > { %v1048_v10 = vadd.f32 %v974_v7, %v802_v18  ;;  %v1223_v16 = vpop.f32.mrf.mxu0  ;;  %v514_v15 = vadd.f32 %v513_v60, %v3284_v1  ;;  %v3419_v7 = vld [vmem:[%s2888_s7 + $0xc8] sm:$0xff] }
 0x103   : > { %v3404_v0 = vadd.f32 %v1220_v2, %v1048_v10  ;;  %2465 = vmatmul.msk.f32.gmra.mxu1 %vm201_vm1, %v3368_v25  ;;  %2495 = vmatmul.msk.f32.gmra.mxu2 %vm201_vm1, %v3399_v38 }
 0x104   : > { %2525 = vmatmul.msk.f32.gmra.mxu3 %vm201_vm1, %v3402_v34  ;;  %2555 = vmatmul.msk.f32.gmra.mxu0 %vm201_vm1, %v2948_v19 }
 0x105   : > { %3934 = vst [vmem:[#allocation35_spill] sm:$0xff] %v3404_v0 }
 0x106   : > { %v731_v28 = vpop.f32.mrf.mxu2 }
 0x107   : > { %v803_v42 = vadd.f32 %v731_v28, %v514_v15  ;;  %v977_v11 = vpop.f32.mrf.mxu3  ;;  %v3433_v28 = vld [vmem:[%s2888_s7 + $0xc2] sm:$0xff] }
 0x108   : > { %v516_v2 = vpop.f32.mrf.mxu1 }
 0x109   : > { %v1049_v18 = vadd.f32 %v977_v11, %v803_v42  ;;  %v1226_v10 = vpop.f32.mrf.mxu0  ;;  %v517_v19 = vadd.f32 %v516_v2, %v3144_v57  ;;  %v3436_v11 = vld [vmem:[%s2888_s7 + $0xd0] sm:$0xff] }
 0x10b   : > { %v3421_v0 = vadd.f32 %v1223_v16, %v1049_v18  ;;  %2466 = vmatmul.msk.f32.gmra.mxu1 %vm201_vm1, %v3385_v24  ;;  %2496 = vmatmul.msk.f32.gmra.mxu2 %vm201_vm1, %v3416_v22 }
 0x10c   : > { %2526 = vmatmul.msk.f32.gmra.mxu3 %vm201_vm1, %v3419_v7  ;;  %2556 = vmatmul.msk.f32.gmra.mxu0 %vm201_vm1, %v2977_v26 }
 0x10d   : > { %3935 = vst [vmem:[#allocation36_spill] sm:$0xff] %v3421_v0 }
 0x10e   : > { %v734_v1 = vpop.f32.mrf.mxu2 }
 0x10f   : > { %v804_v60 = vadd.f32 %v734_v1, %v517_v19  ;;  %v980_v15 = vpop.f32.mrf.mxu3  ;;  %v3450_v1 = vld [vmem:[%s2888_s7 + $0xca] sm:$0xff] }
 0x110   : > { %v519_v16 = vpop.f32.mrf.mxu1  ;;  %3937 = vst [vmem:[#allocation38_spill] sm:$0xff] %v3450_v1 }
 0x111   : > { %v1050_v42 = vadd.f32 %v980_v15, %v804_v60  ;;  %v1229_v18 = vpop.f32.mrf.mxu0  ;;  %v520_v26 = vadd.f32 %v519_v16, %v3166_v63  ;;  %v3453_v15 = vld [vmem:[%s2888_s7 + $0xd8] sm:$0xff] }
 0x113   : > { %v3438_v0 = vadd.f32 %v1226_v10, %v1050_v42  ;;  %2467 = vmatmul.msk.f32.gmra.mxu1 %vm201_vm1, %v3402_v34  ;;  %2497 = vmatmul.msk.f32.gmra.mxu2 %vm201_vm1, %v3433_v28 }
 0x114   : > { %2527 = vmatmul.msk.f32.gmra.mxu3 %vm201_vm1, %v3436_v11  ;;  %2557 = vmatmul.msk.f32.gmra.mxu0 %vm201_vm1, %v3001_v31 }
 0x115   : > { %3936 = vst [vmem:[#allocation37_spill] sm:$0xff] %v3438_v0 }
 0x116   : > { %v737_v57 = vpop.f32.mrf.mxu2 }
 0x117   : > { %v805_v2 = vadd.f32 %v737_v57, %v520_v26  ;;  %v983_v19 = vpop.f32.mrf.mxu3 }
 0x118   : > { %v522_v10 = vpop.f32.mrf.mxu1 }
 0x119   : > { %v1051_v60 = vadd.f32 %v983_v19, %v805_v2  ;;  %v1232_v42 = vpop.f32.mrf.mxu0  ;;  %v523_v31 = vadd.f32 %v522_v10, %v3188_v8  ;;  %v3470_v19 = vld [vmem:[%s2888_s7 + $0xe0] sm:$0xff] }
 0x11b   : > { %v3455_v0 = vadd.f32 %v1229_v18, %v1051_v60  ;;  %2468 = vmatmul.msk.f32.gmra.mxu1 %vm201_vm1, %v3419_v7  ;;  %2498 = vmatmul.msk.f32.gmra.mxu2 %vm201_vm1, %v3450_v1  ;;  %v3467_v18 = vld [vmem:[%s2888_s7 + $0xd2] sm:$0xff] }
 0x11c   : > { %2528 = vmatmul.msk.f32.gmra.mxu3 %vm201_vm1, %v3453_v15  ;;  %2558 = vmatmul.msk.f32.gmra.mxu0 %vm201_vm1, %v3021_v35  ;;  %3939 = vst [vmem:[#allocation40_spill] sm:$0xff] %v3467_v18 }
 0x11d   : > { %3938 = vst [vmem:[#allocation39_spill] sm:$0xff] %v3455_v0  ;;  %v3473_v0 = vld [vmem:[%s2888_s7 + $0xe1] sm:$0xff] }
 0x11e   : > { %v740_v63 = vpop.f32.mrf.mxu2 }
 0x11f   : > { %v806_v16 = vadd.f32 %v740_v63, %v523_v31  ;;  %v986_v26 = vpop.f32.mrf.mxu3 }
 0x120   : > { %v525_v57 = vpop.f32.mrf.mxu1 }
 0x121   : > { %v1052_v2 = vadd.f32 %v986_v26, %v806_v16  ;;  %v1235_v60 = vpop.f32.mrf.mxu0  ;;  %v526_v35 = vadd.f32 %v525_v57, %v3210_v23  ;;  %v3490_v26 = vld [vmem:[%s2888_s7 + $0xe8] sm:$0xff] }
 0x123   : > { %v3475_v1 = vadd.f32 %v1232_v42, %v1052_v2  ;;  %2469 = vmatmul.msk.f32.gmra.mxu1 %vm201_vm1, %v3436_v11  ;;  %2499 = vmatmul.msk.f32.gmra.mxu2 %vm201_vm1, %v3467_v18  ;;  %v3487_v42 = vld [vmem:[%s2888_s7 + $0xda] sm:$0xff] }
 0x124   : > { %2529 = vmatmul.msk.f32.gmra.mxu3 %vm201_vm1, %v3470_v19  ;;  %2559 = vmatmul.msk.f32.gmra.mxu0 %vm201_vm1, %v3473_v0 }
 0x125   : > { %3940 = vst [vmem:[#allocation41_spill] sm:$0xff] %v3475_v1  ;;  %v3493_v1 = vld [vmem:[%s2888_s7 + $0xe9] sm:$0xff] }
 0x126   : > { %v743_v8 = vpop.f32.mrf.mxu2 }
 0x127   : > { %v807_v10 = vadd.f32 %v743_v8, %v526_v35  ;;  %v989_v31 = vpop.f32.mrf.mxu3 }
 0x128   : > { %v528_v63 = vpop.f32.mrf.mxu1 }
 0x129   : > { %v1053_v16 = vadd.f32 %v989_v31, %v807_v10  ;;  %v1238_v2 = vpop.f32.mrf.mxu0  ;;  %v529_v23 = vadd.f32 %v528_v63, %v3232_v40 }
 0x12b   : > { %v3495_v18 = vadd.f32 %v1235_v60, %v1053_v16  ;;  %2470 = vmatmul.msk.f32.gmra.mxu1 %vm201_vm1, %v3453_v15  ;;  %2500 = vmatmul.msk.f32.gmra.mxu2 %vm201_vm1, %v3487_v42 }
 0x12c   : > { %2530 = vmatmul.msk.f32.gmra.mxu3 %vm201_vm1, %v3490_v26  ;;  %2560 = vmatmul.msk.f32.gmra.mxu0 %vm201_vm1, %v3493_v1 }
 0x12e   : > { %v746_v57 = vpop.f32.mrf.mxu2 }
 0x12f   : > { %v808_v35 = vadd.f32 %v746_v57, %v529_v23  ;;  %v992_v8 = vpop.f32.mrf.mxu3 }
 0x130   : > { %v531_v10 = vpop.f32.mrf.mxu1 }
 0x131   : > { %v1054_v60 = vadd.f32 %v992_v8, %v808_v35  ;;  %v1241_v31 = vpop.f32.mrf.mxu0  ;;  %v532_v40 = vadd.f32 %v531_v10, %v3254_v4 }
 0x133   : > { %v3506_v16 = vadd.f32 %v1238_v2, %v1054_v60  ;;  %2563 = vmatmul.msk.f32.vlgmr.msra.gmra.mxu1 %vm201_vm1, %v3049_v43  ;;  %2593 = vmatmul.msk.f32.vlgmr.msra.gmra.mxu2 %vm201_vm1, %v3052_v44 }
 0x134   : > { %2623 = vmatmul.msk.f32.vlgmr.msra.gmra.mxu3 %vm201_vm1, %v2980_v27  ;;  %2653 = vmatmul.msk.f32.vlgmr.msra.gmra.mxu0 %vm201_vm1, %v3075_v47 }
 0x136   : > { %v749_v63 = vpop.f32.mrf.mxu2 }
 0x137   : > { %v809_v23 = vadd.f32 %v749_v63, %v532_v40  ;;  %v995_v57 = vpop.f32.mrf.mxu3 }
 0x138   : > { %v534_v35 = vpop.f32.mrf.mxu1 }
 0x139   : > { %v1055_v2 = vadd.f32 %v995_v57, %v809_v23  ;;  %v1244_v8 = vpop.f32.mrf.mxu0  ;;  %v535_v27 = vadd.f32 %v534_v35, %v3276_v41 }
 0x13b   : > { %v3517_v60 = vadd.f32 %v1241_v31, %v1055_v2  ;;  %2564 = vmatmul.msk.f32.gmra.mxu1 %vm201_vm1, %v3062_v45  ;;  %2594 = vmatmul.msk.f32.gmra.mxu2 %vm201_vm1, %v3065_v46 }
 0x13c   : > { %2624 = vmatmul.msk.f32.gmra.mxu3 %vm201_vm1, %v3004_v32  ;;  %2654 = vmatmul.msk.f32.gmra.mxu0 %vm201_vm1, %v3089_v49 }
 0x13e   : > { %v752_v43 = vpop.f32.mrf.mxu2 }
 0x13f   : > { %v810_v44 = vadd.f32 %v752_v43, %v535_v27  ;;  %v998_v4 = vpop.f32.mrf.mxu3 }
 0x140   : > { %v537_v10 = vpop.f32.mrf.mxu1 }
 0x141   : > { %v1056_v31 = vadd.f32 %v998_v4, %v810_v44  ;;  %v1247_v40 = vpop.f32.mrf.mxu0  ;;  %v538_v32 = vadd.f32 %v537_v10, %v3162_v61 }
 0x143   : > { %v3528_v63 = vadd.f32 %v1244_v8, %v1056_v31  ;;  %2565 = vmatmul.msk.f32.gmra.mxu1 %vm201_vm1, %v3075_v47  ;;  %2595 = vmatmul.msk.f32.gmra.mxu2 %vm201_vm1, %v3078_v48 }
 0x144   : > { %2625 = vmatmul.msk.f32.gmra.mxu3 %vm201_vm1, %v3024_v36  ;;  %2655 = vmatmul.msk.f32.gmra.mxu0 %vm201_vm1, %v3103_v51 }
 0x146   : > { %v755_v45 = vpop.f32.mrf.mxu2 }
 0x147   : > { %v811_v46 = vadd.f32 %v755_v45, %v538_v32  ;;  %v1001_v41 = vpop.f32.mrf.mxu3 }
 0x148   : > { %v540_v23 = vpop.f32.mrf.mxu1 }
 0x149   : > { %v1057_v57 = vadd.f32 %v1001_v41, %v811_v46  ;;  %v1250_v35 = vpop.f32.mrf.mxu0  ;;  %v541_v36 = vadd.f32 %v540_v23, %v3184_v3 }
 0x14b   : > { %v3539_v2 = vadd.f32 %v1247_v40, %v1057_v57  ;;  %2566 = vmatmul.msk.f32.gmra.mxu1 %vm201_vm1, %v3089_v49  ;;  %2596 = vmatmul.msk.f32.gmra.mxu2 %vm201_vm1, %v3092_v50 }
 0x14c   : > { %2626 = vmatmul.msk.f32.gmra.mxu3 %vm201_vm1, %v2891_v5  ;;  %2656 = vmatmul.msk.f32.gmra.mxu0 %vm201_vm1, %v3117_v53 }
 0x14e   : > { %v758_v47 = vpop.f32.mrf.mxu2 }
 0x14f   : > { %v812_v48 = vadd.f32 %v758_v47, %v541_v36  ;;  %v1004_v61 = vpop.f32.mrf.mxu3 }
 0x150   : > { %v543_v8 = vpop.f32.mrf.mxu1 }
 0x151   : > { %v1058_v27 = vadd.f32 %v1004_v61, %v812_v48  ;;  %v1253_v43 = vpop.f32.mrf.mxu0  ;;  %v544_v5 = vadd.f32 %v543_v8, %v3206_v21  ;;  %v3946_v61 = vld [vmem:[#allocation24_spill] sm:$0xff] }
 0x153   : > { %v3550_v44 = vadd.f32 %v1250_v35, %v1058_v27  ;;  %2567 = vmatmul.msk.f32.gmra.mxu1 %vm201_vm1, %v3103_v51  ;;  %2597 = vmatmul.msk.f32.gmra.mxu2 %vm201_vm1, %v3106_v52 }
 0x154   : > { %2627 = vmatmul.msk.f32.gmra.mxu3 %vm201_vm1, %v2908_v9  ;;  %2657 = vmatmul.msk.f32.gmra.mxu0 %vm201_vm1, %v3131_v55 }
 0x156   : > { %v761_v49 = vpop.f32.mrf.mxu2 }
 0x157   : > { %v813_v50 = vadd.f32 %v761_v49, %v544_v5  ;;  %v1007_v3 = vpop.f32.mrf.mxu3 }
 0x158   : > { %v546_v4 = vpop.f32.mrf.mxu1 }
 0x159   : > { %v1059_v10 = vadd.f32 %v1007_v3, %v813_v50  ;;  %v1256_v31 = vpop.f32.mrf.mxu0  ;;  %v547_v9 = vadd.f32 %v546_v4, %v3228_v33 }
 0x15b   : > { %v3561_v40 = vadd.f32 %v1253_v43, %v1059_v10  ;;  %2568 = vmatmul.msk.f32.gmra.mxu1 %vm201_vm1, %v3117_v53  ;;  %2598 = vmatmul.msk.f32.gmra.mxu2 %vm201_vm1, %v3120_v54  ;;  %v3942_v53 = vld [vmem:[#allocation20_spill] sm:$0xff]  ;;  %v3948_v10 = vld [vmem:[#allocation6_spill] sm:$0xff] }
 0x15c   : > { %2628 = vmatmul.msk.f32.gmra.mxu3 %vm201_vm1, %v2925_v13  ;;  %2658 = vmatmul.msk.f32.gmra.mxu0 %vm201_vm1, %v3147_v58  ;;  %v3941_v13 = vld [vmem:[#allocation9_spill] sm:$0xff] }
 0x15e   : > { %v764_v51 = vpop.f32.mrf.mxu2 }
 0x15f   : > { %v814_v52 = vadd.f32 %v764_v51, %v547_v9  ;;  %v1010_v21 = vpop.f32.mrf.mxu3  ;;  %v3950_v9 = vld [vmem:[#allocation27_spill] sm:$0xff] }
 0x160   : > { %v549_v32 = vpop.f32.mrf.mxu1 }
 0x161   : > { %v1060_v45 = vadd.f32 %v1010_v21, %v814_v52  ;;  %v1259_v46 = vpop.f32.mrf.mxu0  ;;  %v550_v54 = vadd.f32 %v549_v32, %v3942_v53  ;;  %v1818_v53 = vld [vmem:[%s2888_s7 + $0x69] sm:$0xff] }
 0x163   : > { %v3572_v41 = vadd.f32 %v1256_v31, %v1060_v45  ;;  %2569 = vmatmul.msk.f32.gmra.mxu1 %vm201_vm1, %v3131_v55  ;;  %2599 = vmatmul.msk.f32.gmra.mxu2 %vm201_vm1, %v3134_v56  ;;  %v3943_v55 = vld [vmem:[#allocation7_spill] sm:$0xff]  ;;  %v3945_v56 = vld [vmem:[#allocation12_spill] sm:$0xff] }
 0x164   : > { %2629 = vmatmul.msk.f32.gmra.mxu3 %vm201_vm1, %v2942_v17  ;;  %2659 = vmatmul.msk.f32.gmra.mxu0 %vm201_vm1, %v3941_v13  ;;  %v3944_v17 = vld [vmem:[#allocation5_spill] sm:$0xff]  ;;  %v3949_v31 = vld [vmem:[#allocation15_spill] sm:$0xff] }
 0x166   : > { %v767_v33 = vpop.f32.mrf.mxu2 }
 0x167   : > { %v815_v23 = vadd.f32 %v767_v33, %v550_v54  ;;  %v1013_v57 = vpop.f32.mrf.mxu3  ;;  %v3951_v33 = vld [vmem:[#allocation13_spill] sm:$0xff] }
 0x168   : > { %v552_v35 = vpop.f32.mrf.mxu1 }
 0x169   : > { %v1061_v36 = vadd.f32 %v1013_v57, %v815_v23  ;;  %v1262_v47 = vpop.f32.mrf.mxu0  ;;  %v553_v8 = vadd.f32 %v552_v35, %v3946_v61  ;;  %v3952_v23 = vld [vmem:[#allocation18_spill] sm:$0xff]  ;;  %v3953_v57 = vld [vmem:[#allocation8_spill] sm:$0xff] }
 0x16b   : > { %v3583_v48 = vadd.f32 %v1259_v46, %v1061_v36  ;;  %2570 = vmatmul.msk.f32.gmra.mxu1 %vm201_vm1, %v3147_v58  ;;  %2600 = vmatmul.msk.f32.gmra.mxu2 %vm201_vm1, %v3943_v55  ;;  %v3947_v58 = vld [vmem:[#allocation10_spill] sm:$0xff] }
 0x16c   : > { %2630 = vmatmul.msk.f32.gmra.mxu3 %vm201_vm1, %v3944_v17  ;;  %2660 = vmatmul.msk.f32.gmra.mxu0 %vm201_vm1, %v3945_v56 }
 0x16e   : > { %v770_v27 = vpop.f32.mrf.mxu2 }
 0x16f   : > { %v816_v43 = vadd.f32 %v770_v27, %v553_v8  ;;  %v1016_v5 = vpop.f32.mrf.mxu3  ;;  %v1819_v8 = vld [vmem:[%s2888_s7 + $0x71] sm:$0xff] }
 0x170   : > { %v555_v49 = vpop.f32.mrf.mxu1 }
 0x171   : > { %v1062_v50 = vadd.f32 %v1016_v5, %v816_v43  ;;  %v1265_v3 = vpop.f32.mrf.mxu0  ;;  %v556_v51 = vadd.f32 %v555_v49, %v3950_v9  ;;  %v3955_v5 = vld [vmem:[#allocation22_spill] sm:$0xff]  ;;  %v3956_v49 = vld [vmem:[#allocation11_spill] sm:$0xff] }
 0x173   : > { %v3594_v4 = vadd.f32 %v1262_v47, %v1062_v50  ;;  %2571 = vmatmul.msk.f32.gmra.mxu1 %vm201_vm1, %v3941_v13  ;;  %2601 = vmatmul.msk.f32.gmra.mxu2 %vm201_vm1, %v3947_v58 }
 0x174   : > { %2631 = vmatmul.msk.f32.gmra.mxu3 %vm201_vm1, %v3948_v10  ;;  %2661 = vmatmul.msk.f32.gmra.mxu0 %vm201_vm1, %v3949_v31 }
 0x176   : > { %v773_v52 = vpop.f32.mrf.mxu2 }
 0x177   : > { %v817_v21 = vadd.f32 %v773_v52, %v556_v51  ;;  %v1019_v32 = vpop.f32.mrf.mxu3  ;;  %v1820_v52 = vld [vmem:[%s2888_s7 + $0x79] sm:$0xff] }
 0x178   : > { %v558_v45 = vpop.f32.mrf.mxu1 }
 0x179   : > { %v1063_v46 = vadd.f32 %v1019_v32, %v817_v21  ;;  %v1268_v54 = vpop.f32.mrf.mxu0  ;;  %v559_v35 = vadd.f32 %v558_v45, %v3953_v57  ;;  %v3958_v45 = vld [vmem:[#allocation26_spill] sm:$0xff] }
 0x17b   : > { %v3606_v13 = vadd.f32 %v1265_v3, %v1063_v46  ;;  %2572 = vmatmul.msk.f32.gmra.mxu1 %vm201_vm1, %v3945_v56  ;;  %2602 = vmatmul.msk.f32.gmra.mxu2 %vm201_vm1, %v3951_v33  ;;  %v3954_v56 = vld [vmem:[#allocation16_spill] sm:$0xff]  ;;  %v3959_v46 = vld [vmem:[#allocation14_spill] sm:$0xff] }
 0x17c   : > { %2632 = vmatmul.msk.f32.gmra.mxu3 %vm201_vm1, %v1818_v53  ;;  %2662 = vmatmul.msk.f32.gmra.mxu0 %vm201_vm1, %v3952_v23 }
 0x17e   : > { %v776_v36 = vpop.f32.mrf.mxu2 }
 0x17f   : > { %v818_v47 = vadd.f32 %v776_v36, %v559_v35  ;;  %v1022_v55 = vpop.f32.mrf.mxu3 }
 0x180   : > { %v561_v17 = vpop.f32.mrf.mxu1 }
 0x181   : > { %v1064_v61 = vadd.f32 %v1022_v55, %v818_v47  ;;  %v1271_v27 = vpop.f32.mrf.mxu0  ;;  %v562_v50 = vadd.f32 %v561_v17, %v3956_v49  ;;  %v1821_v47 = vld [vmem:[%s2888_s7 + $0x81] sm:$0xff] }
 0x183   : > { %v3617_v43 = vadd.f32 %v1268_v54, %v1064_v61  ;;  %2573 = vmatmul.msk.f32.gmra.mxu1 %vm201_vm1, %v3949_v31  ;;  %2603 = vmatmul.msk.f32.gmra.mxu2 %vm201_vm1, %v3954_v56  ;;  %v3957_v31 = vld [vmem:[#allocation19_spill] sm:$0xff]  ;;  %v3961_v61 = vld [vmem:[#allocation29_spill] sm:$0xff] }
 0x184   : > { %2633 = vmatmul.msk.f32.gmra.mxu3 %vm201_vm1, %v1819_v8  ;;  %2663 = vmatmul.msk.f32.gmra.mxu0 %vm201_vm1, %v3955_v5  ;;  %v3962_v8 = vld [vmem:[#allocation17_spill] sm:$0xff] }
 0x186   : > { %v779_v3 = vpop.f32.mrf.mxu2 }
 0x187   : > { %v819_v58 = vadd.f32 %v779_v3, %v562_v50  ;;  %v1025_v10 = vpop.f32.mrf.mxu3 }
 0x188   : > { %v564_v9 = vpop.f32.mrf.mxu1 }
 0x189   : > { %v1065_v51 = vadd.f32 %v1025_v10, %v819_v58  ;;  %v1274_v21 = vpop.f32.mrf.mxu0  ;;  %v565_v53 = vadd.f32 %v564_v9, %v3959_v46  ;;  %v1822_v10 = vld [vmem:[%s2888_s7 + $0x89] sm:$0xff] }
 0x18b   : > { %v3628_v32 = vadd.f32 %v1271_v27, %v1065_v51  ;;  %2574 = vmatmul.msk.f32.gmra.mxu1 %vm201_vm1, %v3952_v23  ;;  %2604 = vmatmul.msk.f32.gmra.mxu2 %vm201_vm1, %v3957_v31  ;;  %v3960_v23 = vld [vmem:[#allocation23_spill] sm:$0xff] }
 0x18c   : > { %2634 = vmatmul.msk.f32.gmra.mxu3 %vm201_vm1, %v1820_v52  ;;  %2664 = vmatmul.msk.f32.gmra.mxu0 %vm201_vm1, %v3958_v45 }
 0x18e   : > { %v782_v54 = vpop.f32.mrf.mxu2 }
 0x18f   : > { %v820_v33 = vadd.f32 %v782_v54, %v565_v53  ;;  %v1028_v57 = vpop.f32.mrf.mxu3 }
 0x190   : > { %v567_v35 = vpop.f32.mrf.mxu1 }
 0x191   : > { %v1066_v36 = vadd.f32 %v1028_v57, %v820_v33  ;;  %v1277_v55 = vpop.f32.mrf.mxu0  ;;  %v568_v27 = vadd.f32 %v567_v35, %v3962_v8  ;;  %v1823_v33 = vld [vmem:[%s2888_s7 + $0x91] sm:$0xff] }
 0x193   : > { %v3639_v17 = vadd.f32 %v1274_v21, %v1066_v36  ;;  %2575 = vmatmul.msk.f32.gmra.mxu1 %vm201_vm1, %v3955_v5  ;;  %2605 = vmatmul.msk.f32.gmra.mxu2 %vm201_vm1, %v3960_v23  ;;  %v3963_v5 = vld [vmem:[#allocation21_spill] sm:$0xff] }
 0x194   : > { %2635 = vmatmul.msk.f32.gmra.mxu3 %vm201_vm1, %v1821_v47  ;;  %2665 = vmatmul.msk.f32.gmra.mxu0 %vm201_vm1, %v3961_v61 }
 0x196   : > { %v785_v56 = vpop.f32.mrf.mxu2 }
 0x197   : > { %v821_v49 = vadd.f32 %v785_v56, %v568_v27  ;;  %v1031_v50 = vpop.f32.mrf.mxu3  ;;  %v1824_v27 = vld [vmem:[%s2888_s7 + $0x99] sm:$0xff] }
 0x198   : > { %v570_v3 = vpop.f32.mrf.mxu1 }
 0x199   : > { %v1067_v58 = vadd.f32 %v1031_v50, %v821_v49  ;;  %v1280_v9 = vpop.f32.mrf.mxu0  ;;  %v571_v52 = vadd.f32 %v570_v3, %v3963_v5  ;;  %v1825_v5 = vld [vmem:[%s2888_s7 + $0xa1] sm:$0xff] }
 0x19b   : > { %v3650_v51 = vadd.f32 %v1277_v55, %v1067_v58  ;;  %2576 = vmatmul.msk.f32.gmra.mxu1 %vm201_vm1, %v3958_v45  ;;  %2606 = vmatmul.msk.f32.gmra.mxu2 %vm201_vm1, %v3282_v37  ;;  %v3964_v37 = vld [vmem:[#allocation25_spill] sm:$0xff] }
 0x19c   : > { %2636 = vmatmul.msk.f32.gmra.mxu3 %vm201_vm1, %v1822_v10  ;;  %2666 = vmatmul.msk.f32.gmra.mxu0 %vm201_vm1, %v3314_v59 }
 0x19e   : > { %v788_v21 = vpop.f32.mrf.mxu2 }
 0x19f   : > { %v822_v31 = vadd.f32 %v788_v21, %v571_v52  ;;  %v1034_v46 = vpop.f32.mrf.mxu3 }
 0x1a0   : > { %v573_v53 = vpop.f32.mrf.mxu1 }
 0x1a1   : > { %v1068_v54 = vadd.f32 %v1034_v46, %v822_v31  ;;  %v1283_v57 = vpop.f32.mrf.mxu0  ;;  %v574_v45 = vadd.f32 %v573_v53, %v3964_v37 }
 0x1a3   : > { %v3661_v35 = vadd.f32 %v1280_v9, %v1068_v54  ;;  %2577 = vmatmul.msk.f32.gmra.mxu1 %vm201_vm1, %v3961_v61  ;;  %2607 = vmatmul.msk.f32.gmra.mxu2 %vm201_vm1, %v3302_v12  ;;  %v3965_v12 = vld [vmem:[#allocation28_spill] sm:$0xff] }
 0x1a4   : > { %2637 = vmatmul.msk.f32.gmra.mxu3 %vm201_vm1, %v1823_v33  ;;  %2667 = vmatmul.msk.f32.gmra.mxu0 %vm201_vm1, %v3331_v39 }
 0x1a6   : > { %v791_v36 = vpop.f32.mrf.mxu2 }
 0x1a7   : > { %v823_v47 = vadd.f32 %v791_v36, %v574_v45  ;;  %v1037_v55 = vpop.f32.mrf.mxu3 }
 0x1a8   : > { %v576_v23 = vpop.f32.mrf.mxu1 }
 0x1a9   : > { %v1069_v8 = vadd.f32 %v1037_v55, %v823_v47  ;;  %v1286_v56 = vpop.f32.mrf.mxu0  ;;  %v577_v61 = vadd.f32 %v576_v23, %v3965_v12 }
 0x1ab   : > { %v3672_v49 = vadd.f32 %v1283_v57, %v1069_v8  ;;  %2578 = vmatmul.msk.f32.gmra.mxu1 %vm201_vm1, %v3314_v59  ;;  %2608 = vmatmul.msk.f32.gmra.mxu2 %vm201_vm1, %v3317_v6  ;;  %v3966_v6 = vld [vmem:[#allocation30_spill] sm:$0xff]  ;;  %v1827_v8 = vld [vmem:[%s2888_s7 + $0xb1] sm:$0xff] }
 0x1ac   : > { %2638 = vmatmul.msk.f32.gmra.mxu3 %vm201_vm1, %v1824_v27  ;;  %2668 = vmatmul.msk.f32.gmra.mxu0 %vm201_vm1, %v3348_v29 }
 0x1ae   : > { %v794_v50 = vpop.f32.mrf.mxu2 }
 0x1af   : > { %v824_v3 = vadd.f32 %v794_v50, %v577_v61  ;;  %v1040_v58 = vpop.f32.mrf.mxu3 }
 0x1b0   : > { %v1451_v10 = vpop.f32.mrf.mxu1 }
 0x1b1   : > { %v1070_v9 = vadd.f32 %v1040_v58, %v824_v3  ;;  %v2189_v52 = vpop.f32.mrf.mxu0  ;;  %v1535_v21 = vadd.f32 %v1451_v10, %v3966_v6 }
 0x1b3   : > { %v3683_v59 = vadd.f32 %v1286_v56, %v1070_v9  ;;  %2579 = vmatmul.msk.f32.gmra.mxu1 %vm201_vm1, %v3331_v39  ;;  %2609 = vmatmul.msk.f32.gmra.mxu2 %vm201_vm1, %v3334_v14  ;;  %v1826_v39 = vld [vmem:[%s2888_s7 + $0xa9] sm:$0xff]  ;;  %v3968_v56 = vld [vmem:[#allocation32_spill] sm:$0xff] }
 0x1b4   : > { %2639 = vmatmul.msk.f32.gmra.mxu3 %vm201_vm1, %v1825_v5  ;;  %2669 = vmatmul.msk.f32.gmra.mxu0 %vm201_vm1, %v3365_v30  ;;  %v3967_v14 = vld [vmem:[#allocation31_spill] sm:$0xff]  ;;  %v1828_v9 = vld [vmem:[%s2888_s7 + $0xb9] sm:$0xff] }
 0x1b6   : > { %v1697_v31 = vpop.f32.mrf.mxu2 }
 0x1b7   : > { %v1781_v46 = vadd.f32 %v1697_v31, %v1535_v21  ;;  %v1943_v53 = vpop.f32.mrf.mxu3 }
 0x1b8   : > { %v1454_v54 = vpop.f32.mrf.mxu1 }
 0x1b9   : > { %v2027_v33 = vadd.f32 %v1943_v53, %v1781_v46  ;;  %v2192_v57 = vpop.f32.mrf.mxu0  ;;  %v1536_v45 = vadd.f32 %v1454_v54, %v3967_v14  ;;  %v1829_v54 = vld [vmem:[%s2888_s7 + $0xc1] sm:$0xff] }
 0x1bb   : > { %v2273_v37 = vadd.f32 %v2189_v52, %v2027_v33  ;;  %2580 = vmatmul.msk.f32.gmra.mxu1 %vm201_vm1, %v3348_v29  ;;  %2610 = vmatmul.msk.f32.gmra.mxu2 %vm201_vm1, %v3351_v62 }
 0x1bc   : > { %2640 = vmatmul.msk.f32.gmra.mxu3 %vm201_vm1, %v1826_v39  ;;  %2670 = vmatmul.msk.f32.gmra.mxu0 %vm201_vm1, %v3382_v20 }
 0x1bd   : > { %2301 = vst [vmem:[%s3705_s27] sm:$0xff] %v2273_v37 }
 0x1be   : > { %v1700_v36 = vpop.f32.mrf.mxu2 }
 0x1bf   : > { %v1782_v47 = vadd.f32 %v1700_v36, %v1536_v45  ;;  %v1946_v55 = vpop.f32.mrf.mxu3 }
 0x1c0   : > { %v1457_v23 = vpop.f32.mrf.mxu1 }
 0x1c1   : > { %v2028_v29 = vadd.f32 %v1946_v55, %v1782_v47  ;;  %v2195_v62 = vpop.f32.mrf.mxu0  ;;  %v1537_v12 = vadd.f32 %v1457_v23, %v3968_v56  ;;  %v1830_v47 = vld [vmem:[%s2888_s7 + $0xc9] sm:$0xff] }
 0x1c2   : > { %v3972_v23 = vld [vmem:[#allocation35_spill] sm:$0xff] }
 0x1c3   : > { %v2274_v27 = vadd.f32 %v2192_v57, %v2028_v29  ;;  %2581 = vmatmul.msk.f32.gmra.mxu1 %vm201_vm1, %v3365_v30  ;;  %2611 = vmatmul.msk.f32.gmra.mxu2 %vm201_vm1, %v3368_v25  ;;  %v3969_v25 = vld [vmem:[#allocation33_spill] sm:$0xff] }
 0x1c4   : > { %2641 = vmatmul.msk.f32.gmra.mxu3 %vm201_vm1, %v1827_v8  ;;  %2671 = vmatmul.msk.f32.gmra.mxu0 %vm201_vm1, %v3399_v38 }
 0x1c5   : > { %2302 = vst [vmem:[%s3705_s27 + $0x8] sm:$0xff] %v2274_v27 }
 0x1c6   : > { %v1703_v61 = vpop.f32.mrf.mxu2 }
 0x1c7   : > { %v1783_v50 = vadd.f32 %v1703_v61, %v1537_v12  ;;  %v1949_v3 = vpop.f32.mrf.mxu3  ;;  %v1831_v61 = vld [vmem:[%s2888_s7 + $0xd1] sm:$0xff] }
 0x1c8   : > { %v1460_v58 = vpop.f32.mrf.mxu1 }
 0x1c9   : > { %v2029_v10 = vadd.f32 %v1949_v3, %v1783_v50  ;;  %v2198_v30 = vpop.f32.mrf.mxu0  ;;  %v1538_v52 = vadd.f32 %v1460_v58, %v3969_v25  ;;  %v3974_v3 = vld [vmem:[#allocation36_spill] sm:$0xff] }
 0x1cb   : > { %v2275_v5 = vadd.f32 %v2195_v62, %v2029_v10  ;;  %2582 = vmatmul.msk.f32.gmra.mxu1 %vm201_vm1, %v3382_v20  ;;  %2612 = vmatmul.msk.f32.gmra.mxu2 %vm201_vm1, %v3385_v24  ;;  %v3970_v24 = vld [vmem:[#allocation34_spill] sm:$0xff] }
 0x1cc   : > { %2642 = vmatmul.msk.f32.gmra.mxu3 %vm201_vm1, %v1828_v9  ;;  %2672 = vmatmul.msk.f32.gmra.mxu0 %vm201_vm1, %v3416_v22 }
 0x1cd   : > { %2303 = vst [vmem:[%s3705_s27 + $0x10] sm:$0xff] %v2275_v5 }
 0x1ce   : > { %v1706_v6 = vpop.f32.mrf.mxu2 }
 0x1cf   : > { %v1784_v21 = vadd.f32 %v1706_v6, %v1538_v52  ;;  %v1952_v31 = vpop.f32.mrf.mxu3  ;;  %v1832_v52 = vld [vmem:[%s2888_s7 + $0xd9] sm:$0xff] }
 0x1d0   : > { %v1463_v46 = vpop.f32.mrf.mxu1 }
 0x1d1   : > { %v2030_v53 = vadd.f32 %v1952_v31, %v1784_v21  ;;  %v2201_v20 = vpop.f32.mrf.mxu0  ;;  %v1539_v39 = vadd.f32 %v1463_v46, %v3970_v24  ;;  %v2079_v24 = vld [vmem:[%s2888_s7 + $0xe2] sm:$0xff] }
 0x1d3   : > { %v2276_v33 = vadd.f32 %v2198_v30, %v2030_v53  ;;  %2583 = vmatmul.msk.f32.gmra.mxu1 %vm201_vm1, %v3399_v38  ;;  %2613 = vmatmul.msk.f32.gmra.mxu2 %vm201_vm1, %v3402_v34  ;;  %v3971_v34 = vld [vmem:[#allocation38_spill] sm:$0xff] }
 0x1d4   : > { %2643 = vmatmul.msk.f32.gmra.mxu3 %vm201_vm1, %v1829_v54  ;;  %2673 = vmatmul.msk.f32.gmra.mxu0 %vm201_vm1, %v3433_v28 }
 0x1d5   : > { %2304 = vst [vmem:[%s3705_s27 + $0x18] sm:$0xff] %v2276_v33 }
 0x1d6   : > { %v1709_v57 = vpop.f32.mrf.mxu2 }
 0x1d7   : > { %v1785_v37 = vadd.f32 %v1709_v57, %v1539_v39  ;;  %v1955_v14 = vpop.f32.mrf.mxu3 }
 0x1d8   : > { %v1466_v45 = vpop.f32.mrf.mxu1 }
 0x1d9   : > { %v2031_v36 = vadd.f32 %v1955_v14, %v1785_v37  ;;  %v2204_v38 = vpop.f32.mrf.mxu0  ;;  %v1540_v29 = vadd.f32 %v1466_v45, %v3972_v23 }
 0x1db   : > { %v2277_v55 = vadd.f32 %v2201_v20, %v2031_v36  ;;  %2584 = vmatmul.msk.f32.gmra.mxu1 %vm201_vm1, %v3416_v22  ;;  %2614 = vmatmul.msk.f32.gmra.mxu2 %vm201_vm1, %v3419_v7  ;;  %v3973_v7 = vld [vmem:[#allocation40_spill] sm:$0xff] }
 0x1dc   : > { %2644 = vmatmul.msk.f32.gmra.mxu3 %vm201_vm1, %v1830_v47  ;;  %2674 = vmatmul.msk.f32.gmra.mxu0 %vm201_vm1, %v3971_v34 }
 0x1dd   : > { %2305 = vst [vmem:[%s3705_s27 + $0x20] sm:$0xff] %v2277_v55  ;;  %v2080_v55 = vld [vmem:[%s2888_s7 + $0xea] sm:$0xff] }
 0x1de   : > { %v1712_v8 = vpop.f32.mrf.mxu2 }
 0x1df   : > { %v1786_v62 = vadd.f32 %v1712_v8, %v1540_v29  ;;  %v1958_v27 = vpop.f32.mrf.mxu3 }
 0x1e0   : > { %v1469_v56 = vpop.f32.mrf.mxu1 }
 0x1e1   : > { %v2032_v12 = vadd.f32 %v1958_v27, %v1786_v62  ;;  %v2207_v22 = vpop.f32.mrf.mxu0  ;;  %v1541_v58 = vadd.f32 %v1469_v56, %v3974_v3  ;;  %v1589_v27 = vld [vmem:[%s2888_s7 + $0xf0] sm:$0xff] }
 0x1e3   : > { %v2278_v50 = vadd.f32 %v2204_v38, %v2032_v12  ;;  %2585 = vmatmul.msk.f32.gmra.mxu1 %vm201_vm1, %v3433_v28  ;;  %2615 = vmatmul.msk.f32.gmra.mxu2 %vm201_vm1, %v3436_v11  ;;  %v3975_v11 = vld [vmem:[#allocation37_spill] sm:$0xff] }
 0x1e4   : > { %2645 = vmatmul.msk.f32.gmra.mxu3 %vm201_vm1, %v1831_v61  ;;  %2675 = vmatmul.msk.f32.gmra.mxu0 %vm201_vm1, %v3973_v7 }
 0x1e5   : > { %2306 = vst [vmem:[%s3705_s27 + $0x28] sm:$0xff] %v2278_v50 }
 0x1e6   : > { %v1715_v10 = vpop.f32.mrf.mxu2 }
 0x1e7   : > { %v1787_v9 = vadd.f32 %v1715_v10, %v1541_v58  ;;  %v1961_v30 = vpop.f32.mrf.mxu3  ;;  %v1590_v58 = vld [vmem:[%s2888_s7 + $0xf8] sm:$0xff] }
 0x1e8   : > { %v1472_v5 = vpop.f32.mrf.mxu1 }
 0x1e9   : > { %v2033_v25 = vadd.f32 %v1961_v30, %v1787_v9  ;;  %v2210_v28 = vpop.f32.mrf.mxu0  ;;  %v1542_v21 = vadd.f32 %v1472_v5, %v3975_v11  ;;  %v1836_v9 = vld [vmem:[%s2888_s7 + $0xf9] sm:$0xff] }
 0x1ea   : > { %v2082_v5 = vld [vmem:[%s2888_s7 + $0xfa] sm:$0xff] }
 0x1eb   : > { %v2279_v6 = vadd.f32 %v2207_v22, %v2033_v25  ;;  %2586 = vmatmul.msk.f32.gmra.mxu1 %vm201_vm1, %v3971_v34  ;;  %2616 = vmatmul.msk.f32.gmra.mxu2 %vm201_vm1, %v3453_v15  ;;  %v3976_v15 = vld [vmem:[#allocation39_spill] sm:$0xff] }
 0x1ec   : > { %2646 = vmatmul.msk.f32.gmra.mxu3 %vm201_vm1, %v1832_v52  ;;  %2676 = vmatmul.msk.f32.gmra.mxu0 %vm201_vm1, %v3487_v42 }
 0x1ed   : > { %2307 = vst [vmem:[%s3705_s27 + $0x30] sm:$0xff] %v2279_v6 }
 0x1ee   : > { %v1718_v31 = vpop.f32.mrf.mxu2 }
 0x1ef   : > { %v1788_v46 = vadd.f32 %v1718_v31, %v1542_v21  ;;  %v1964_v53 = vpop.f32.mrf.mxu3 }
 0x1f0   : > { %v1475_v54 = vpop.f32.mrf.mxu1 }
 0x1f1   : > { %v2034_v20 = vadd.f32 %v1964_v53, %v1788_v46  ;;  %v2213_v33 = vpop.f32.mrf.mxu0  ;;  %v1543_v57 = vadd.f32 %v1475_v54, %v3976_v15 }
 0x1f3   : > { %v2280_v39 = vadd.f32 %v2210_v28, %v2034_v20  ;;  %2587 = vmatmul.msk.f32.gmra.mxu1 %vm201_vm1, %v3973_v7  ;;  %2617 = vmatmul.msk.f32.gmra.mxu2 %vm201_vm1, %v3470_v19 }
 0x1f4   : > { %2647 = vmatmul.msk.f32.gmra.mxu3 %vm201_vm1, %v3473_v0  ;;  %2677 = vmatmul.msk.f32.gmra.mxu0 %vm201_vm1, %v2079_v24  ;;  %v3977_v0 = vld [vmem:[#allocation41_spill] sm:$0xff] }
 0x1f5   : > { %2308 = vst [vmem:[%s3705_s27 + $0x38] sm:$0xff] %v2280_v39 }
 0x1f6   : > { %v1721_v37 = vpop.f32.mrf.mxu2 }
 0x1f7   : > { %v1789_v14 = vadd.f32 %v1721_v37, %v1543_v57  ;;  %v1967_v45 = vpop.f32.mrf.mxu3 }
 0x1f8   : > { %v1478_v36 = vpop.f32.mrf.mxu1 }
 0x1f9   : > { %v2035_v47 = vadd.f32 %v1967_v45, %v1789_v14  ;;  %v2216_v38 = vpop.f32.mrf.mxu0  ;;  %v1544_v34 = vadd.f32 %v1478_v36, %v3977_v0 }
 0x1fb   : > { %v2281_v19 = vadd.f32 %v2213_v33, %v2035_v47  ;;  %2588 = vmatmul.msk.f32.gmra.mxu1 %vm201_vm1, %v3487_v42  ;;  %2618 = vmatmul.msk.f32.gmra.mxu2 %vm201_vm1, %v3490_v26  ;;  %v1835_v42 = vld [vmem:[%s2888_s7 + $0xf1] sm:$0xff] }
 0x1fc   : > { %2648 = vmatmul.msk.f32.gmra.mxu3 %vm201_vm1, %v3493_v1  ;;  %2678 = vmatmul.msk.f32.gmra.mxu0 %vm201_vm1, %v2080_v55  ;;  %v2081_v26 = vld [vmem:[%s2888_s7 + $0xf2] sm:$0xff]  ;;  %s2747_s7 = scalar_lea.hbm %s2746_s6, 224 }
 0x1fd   : > { %2309 = vst [vmem:[%s3705_s27 + $0x40] sm:$0xff] %v2281_v19  ;;  %p2748_p11 = scmp.ne.s32.totalorder %s2746_s6, %s2747_s7  ;;  %p2753_p1 = scmp.lt.s32.totalorder %s2751_s16, %s2747_s7 }
 0x1fe   : > { %v1724_v23 = vpop.f32.mrf.mxu2 }
 0x1ff   : > { %v1790_v29 = vadd.f32 %v1724_v23, %v1544_v34  ;;  %v1970_v8 = vpop.f32.mrf.mxu3  ;;  %p2749_p12 = pnand %p2748_p11, %p2850_p5  ;;  %p2754_p2 = por %p2753_p1, %p2752_p0 }
 0x200   : > { %v1481_v62 = vpop.f32.mrf.mxu1 }
 0x201   : > { %v2036_v56 = vadd.f32 %v1970_v8, %v1790_v29  ;;  %v2219_v12 = vpop.f32.mrf.mxu0  ;;  %v1545_v1 = vadd.f32 %v1481_v62, %v3495_v18  ;;  %p2750_p13 = pneg %p2749_p12 }
 0x203   : > { %v2282_v61 = vadd.f32 %v2216_v38, %v2036_v56  ;;  %2589 = vmatmul.msk.f32.gmra.mxu1 %vm201_vm1, %v2079_v24  ;;  %2619 = vmatmul.msk.f32.gmra.mxu2 %vm201_vm1, %v1589_v27  ;;  %p2755_p3 = pnand %p2754_p2, %p2750_p13 }
 0x204   : > { %2649 = vmatmul.msk.f32.gmra.mxu3 %vm201_vm1, %v1835_v42  ;;  %2679 = vmatmul.msk.f32.gmra.mxu0 %vm201_vm1, %v2081_v26 }
 0x205   : > { %2310 = vst [vmem:[%s3705_s27 + $0x48] sm:$0xff] %v2282_v61 }
 0x206   : > { %v1727_v22 = vpop.f32.mrf.mxu2 }
 0x207   : > { %v1791_v50 = vadd.f32 %v1727_v22, %v1545_v1  ;;  %v1973_v7 = vpop.f32.mrf.mxu3 }
 0x208   : > { %v1484_v3 = vpop.f32.mrf.mxu1 }
 0x209   : > { %v2037_v10 = vadd.f32 %v1973_v7, %v1791_v50  ;;  %v2222_v30 = vpop.f32.mrf.mxu0  ;;  %v1546_v18 = vadd.f32 %v1484_v3, %v3506_v16 }
 0x20b   : > { %v2283_v25 = vadd.f32 %v2219_v12, %v2037_v10  ;;  %2590 = vmatmul.msk.f32.gmra.mxu1 %vm201_vm1, %v2080_v55  ;;  %2620 = vmatmul.msk.f32.gmra.mxu2 %vm201_vm1, %v1590_v58 }
 0x20c   : > { %2650 = vmatmul.msk.f32.gmra.mxu3 %vm201_vm1, %v1836_v9  ;;  %2680 = vmatmul.msk.f32.gmra.mxu0 %vm201_vm1, %v2082_v5 }
 0x20d   : > { %2311 = vst [vmem:[%s3705_s27 + $0x50] sm:$0xff] %v2283_v25 }
 0x20e   : > { %v1730_v52 = vpop.f32.mrf.mxu2 }
 0x20f   : > { %v1792_v28 = vadd.f32 %v1730_v52, %v1546_v18  ;;  %v1976_v6 = vpop.f32.mrf.mxu3 }
 0x210   : > { %v1487_v11 = vpop.f32.mrf.mxu1 }
 0x211   : > { %v2038_v21 = vadd.f32 %v1976_v6, %v1792_v28  ;;  %v2225_v31 = vpop.f32.mrf.mxu0  ;;  %v1547_v53 = vadd.f32 %v1487_v11, %v3517_v60 }
 0x213   : > { %v2284_v46 = vadd.f32 %v2222_v30, %v2038_v21 }
 0x215   : > { %2312 = vst [vmem:[%s3705_s27 + $0x58] sm:$0xff] %v2284_v46 }
 0x216   : > { %v1733_v54 = vpop.f32.mrf.mxu2 }
 0x217   : > { %v1793_v20 = vadd.f32 %v1733_v54, %v1547_v53  ;;  %v1979_v33 = vpop.f32.mrf.mxu3 }
 0x218   : > { %v1490_v24 = vpop.f32.mrf.mxu1 }
 0x219   : > { %v2039_v39 = vadd.f32 %v1979_v33, %v1793_v20  ;;  %v2228_v15 = vpop.f32.mrf.mxu0  ;;  %v1548_v57 = vadd.f32 %v1490_v24, %v3528_v63 }
 0x21b   : > { %v2285_v16 = vadd.f32 %v2225_v31, %v2039_v39 }
 0x21d   : > { %2313 = vst [vmem:[%s3705_s27 + $0x60] sm:$0xff] %v2285_v16 }
 0x21e   : > { %v1736_v37 = vpop.f32.mrf.mxu2 }
 0x21f   : > { %v1794_v14 = vadd.f32 %v1736_v37, %v1548_v57  ;;  %v1982_v45 = vpop.f32.mrf.mxu3 }
 0x220   : > { %v1493_v36 = vpop.f32.mrf.mxu1 }
 0x221   : > { %v2040_v47 = vadd.f32 %v1982_v45, %v1794_v14  ;;  %v2231_v38 = vpop.f32.mrf.mxu0  ;;  %v1549_v55 = vadd.f32 %v1493_v36, %v3539_v2 }
 0x223   : > { %v2286_v60 = vadd.f32 %v2228_v15, %v2040_v47 }
 0x225   : > { %2314 = vst [vmem:[%s3705_s27 + $0x68] sm:$0xff] %v2286_v60 }
 0x226   : > { %v1739_v19 = vpop.f32.mrf.mxu2 }
 0x227   : > { %v1795_v0 = vadd.f32 %v1739_v19, %v1549_v55  ;;  %v1985_v34 = vpop.f32.mrf.mxu3 }
 0x228   : > { %v1496_v23 = vpop.f32.mrf.mxu1 }
 0x229   : > { %v2041_v29 = vadd.f32 %v1985_v34, %v1795_v0  ;;  %v2234_v8 = vpop.f32.mrf.mxu0  ;;  %v1550_v62 = vadd.f32 %v1496_v23, %v3550_v44 }
 0x22b   : > { %v2287_v63 = vadd.f32 %v2231_v38, %v2041_v29 }
 0x22d   : > { %2315 = vst [vmem:[%s3705_s27 + $0x70] sm:$0xff] %v2287_v63 }
 0x22e   : > { %v1742_v27 = vpop.f32.mrf.mxu2 }
 0x22f   : > { %v1796_v56 = vadd.f32 %v1742_v27, %v1550_v62  ;;  %v1988_v42 = vpop.f32.mrf.mxu3 }
 0x230   : > { %v1499_v12 = vpop.f32.mrf.mxu1 }
 0x231   : > { %v2042_v26 = vadd.f32 %v1988_v42, %v1796_v56  ;;  %v2237_v61 = vpop.f32.mrf.mxu0  ;;  %v1551_v1 = vadd.f32 %v1499_v12, %v3561_v40 }
 0x233   : > { %v2288_v2 = vadd.f32 %v2234_v8, %v2042_v26 }
 0x235   : > { %2316 = vst [vmem:[%s3705_s27 + $0x78] sm:$0xff] %v2288_v2 }
 0x236   : > { %v1745_v22 = vpop.f32.mrf.mxu2 }
 0x237   : > { %v1797_v50 = vadd.f32 %v1745_v22, %v1551_v1  ;;  %v1991_v7 = vpop.f32.mrf.mxu3 }
 0x238   : > { %v1502_v3 = vpop.f32.mrf.mxu1 }
 0x239   : > { %v2043_v58 = vadd.f32 %v1991_v7, %v1797_v50  ;;  %v2240_v10 = vpop.f32.mrf.mxu0  ;;  %v1552_v9 = vadd.f32 %v1502_v3, %v3572_v41 }
 0x23b   : > { %v2289_v44 = vadd.f32 %v2237_v61, %v2043_v58 }
 0x23d   : > { %2317 = vst [vmem:[%s3705_s27 + $0x80] sm:$0xff] %v2289_v44 }
 0x23e   : > { %v1748_v30 = vpop.f32.mrf.mxu2 }
 0x23f   : > { %v1798_v5 = vadd.f32 %v1748_v30, %v1552_v9  ;;  %v1994_v25 = vpop.f32.mrf.mxu3 }
 0x240   : > { %v1505_v18 = vpop.f32.mrf.mxu1 }
 0x241   : > { %v2044_v52 = vadd.f32 %v1994_v25, %v1798_v5  ;;  %v2243_v28 = vpop.f32.mrf.mxu0  ;;  %v1553_v6 = vadd.f32 %v1505_v18, %v3583_v48 }
 0x243   : > { %v2290_v40 = vadd.f32 %v2240_v10, %v2044_v52 }
 0x245   : > { %2318 = vst [vmem:[%s3705_s27 + $0x88] sm:$0xff] %v2290_v40 }
 0x246   : > { %v1751_v11 = vpop.f32.mrf.mxu2 }
 0x247   : > { %v1799_v21 = vadd.f32 %v1751_v11, %v1553_v6  ;;  %v1997_v31 = vpop.f32.mrf.mxu3 }
 0x248   : > { %v1508_v46 = vpop.f32.mrf.mxu1 }
 0x249   : > { %v2045_v53 = vadd.f32 %v1997_v31, %v1799_v21  ;;  %v2246_v54 = vpop.f32.mrf.mxu0  ;;  %v1554_v20 = vadd.f32 %v1508_v46, %v3594_v4 }
 0x24b   : > { %v2291_v41 = vadd.f32 %v2243_v28, %v2045_v53 }
 0x24d   : > { %2319 = vst [vmem:[%s3705_s27 + $0x90] sm:$0xff] %v2291_v41 }
 0x24e   : > { %v1754_v33 = vpop.f32.mrf.mxu2 }
 0x24f   : > { %v1800_v24 = vadd.f32 %v1754_v33, %v1554_v20  ;;  %v2000_v39 = vpop.f32.mrf.mxu3 }
 0x250   : > { %v1511_v15 = vpop.f32.mrf.mxu1 }
 0x251   : > { %v2046_v16 = vadd.f32 %v2000_v39, %v1800_v24  ;;  %v2249_v57 = vpop.f32.mrf.mxu0  ;;  %v1555_v37 = vadd.f32 %v1511_v15, %v3606_v13 }
 0x253   : > { %v2292_v48 = vadd.f32 %v2246_v54, %v2046_v16 }
 0x255   : > { %2320 = vst [vmem:[%s3705_s27 + $0x98] sm:$0xff] %v2292_v48 }
 0x256   : > { %v1757_v14 = vpop.f32.mrf.mxu2 }
 0x257   : > { %v1801_v45 = vadd.f32 %v1757_v14, %v1555_v37  ;;  %v2003_v36 = vpop.f32.mrf.mxu3 }
 0x258   : > { %v1514_v47 = vpop.f32.mrf.mxu1 }
 0x259   : > { %v2047_v38 = vadd.f32 %v2003_v36, %v1801_v45  ;;  %v2252_v60 = vpop.f32.mrf.mxu0  ;;  %v1556_v55 = vadd.f32 %v1514_v47, %v3617_v43 }
 0x25b   : > { %v2293_v4 = vadd.f32 %v2249_v57, %v2047_v38 }
 0x25d   : > { %2321 = vst [vmem:[%s3705_s27 + $0xa0] sm:$0xff] %v2293_v4 }
 0x25e   : > { %v1760_v19 = vpop.f32.mrf.mxu2 }
 0x25f   : > { %v1802_v0 = vadd.f32 %v1760_v19, %v1556_v55  ;;  %v2006_v34 = vpop.f32.mrf.mxu3 }
 0x260   : > { %v1517_v23 = vpop.f32.mrf.mxu1 }
 0x261   : > { %v2048_v29 = vadd.f32 %v2006_v34, %v1802_v0  ;;  %v2255_v8 = vpop.f32.mrf.mxu0  ;;  %v1557_v63 = vadd.f32 %v1517_v23, %v3628_v32 }
 0x263   : > { %v2294_v13 = vadd.f32 %v2252_v60, %v2048_v29 }
 0x265   : > { %2322 = vst [vmem:[%s3705_s27 + $0xa8] sm:$0xff] %v2294_v13 }
 0x266   : > { %v1763_v62 = vpop.f32.mrf.mxu2 }
 0x267   : > { %v1803_v27 = vadd.f32 %v1763_v62, %v1557_v63  ;;  %v2009_v56 = vpop.f32.mrf.mxu3 }
 0x268   : > { %v1520_v42 = vpop.f32.mrf.mxu1 }
 0x269   : > { %v2049_v12 = vadd.f32 %v2009_v56, %v1803_v27  ;;  %v2258_v26 = vpop.f32.mrf.mxu0  ;;  %v1558_v61 = vadd.f32 %v1520_v42, %v3639_v17 }
 0x26b   : > { %v2295_v43 = vadd.f32 %v2255_v8, %v2049_v12 }
 0x26d   : > { %2323 = vst [vmem:[%s3705_s27 + $0xb0] sm:$0xff] %v2295_v43 }
 0x26e   : > { %v1766_v2 = vpop.f32.mrf.mxu2 }
 0x26f   : > { %v1804_v1 = vadd.f32 %v1766_v2, %v1558_v61  ;;  %v2012_v22 = vpop.f32.mrf.mxu3 }
 0x270   : > { %v1523_v50 = vpop.f32.mrf.mxu1 }
 0x271   : > { %v2050_v7 = vadd.f32 %v2012_v22, %v1804_v1  ;;  %v2261_v3 = vpop.f32.mrf.mxu0  ;;  %v1559_v58 = vadd.f32 %v1523_v50, %v3650_v51 }
 0x273   : > { %v2296_v32 = vadd.f32 %v2258_v26, %v2050_v7 }
 0x275   : > { %2324 = vst [vmem:[%s3705_s27 + $0xb8] sm:$0xff] %v2296_v32 }
 0x276   : > { %v1769_v10 = vpop.f32.mrf.mxu2 }
 0x277   : > { %v1805_v44 = vadd.f32 %v1769_v10, %v1559_v58  ;;  %v2015_v9 = vpop.f32.mrf.mxu3 }
 0x278   : > { %v1526_v30 = vpop.f32.mrf.mxu1 }
 0x279   : > { %v2051_v5 = vadd.f32 %v2015_v9, %v1805_v44  ;;  %v2264_v17 = vpop.f32.mrf.mxu0  ;;  %v1560_v18 = vadd.f32 %v1526_v30, %v3661_v35 }
 0x27b   : > { %v2297_v25 = vadd.f32 %v2261_v3, %v2051_v5 }
 0x27d   : > { %2325 = vst [vmem:[%s3705_s27 + $0xc0] sm:$0xff] %v2297_v25 }
 0x27e   : > { %v1772_v52 = vpop.f32.mrf.mxu2 }
 0x27f   : > { %v1806_v28 = vadd.f32 %v1772_v52, %v1560_v18  ;;  %v2018_v40 = vpop.f32.mrf.mxu3 }
 0x280   : > { %v1529_v6 = vpop.f32.mrf.mxu1 }
 0x281   : > { %v2052_v11 = vadd.f32 %v2018_v40, %v1806_v28  ;;  %v1561_v21 = vadd.f32 %v1529_v6, %v3672_v49  ;;  %v2267_v46 = vpop.f32.mrf.mxu0 }
 0x283   : > { %v2298_v51 = vadd.f32 %v2264_v17, %v2052_v11 }
 0x285   : > { %2326 = vst [vmem:[%s3705_s27 + $0xc8] sm:$0xff] %v2298_v51 }
 0x286   : > { %v1775_v31 = vpop.f32.mrf.mxu2 }
 0x287   : > { %v1807_v53 = vadd.f32 %v1775_v31, %v1561_v21  ;;  %v2021_v54 = vpop.f32.mrf.mxu3 }
 0x288   : > { %v1532_v35 = vpop.f32.mrf.mxu1 }
 0x289   : > { %v2053_v41 = vadd.f32 %v2021_v54, %v1807_v53  ;;  %v1562_v33 = vadd.f32 %v1532_v35, %v3683_v59  ;;  %v2270_v15 = vpop.f32.mrf.mxu0 }
 0x28b   : > { %v2299_v20 = vadd.f32 %v2267_v46, %v2053_v41 }
 0x28d   : > { %2327 = vst [vmem:[%s3705_s27 + $0xd0] sm:$0xff] %v2299_v20 }
 0x28e   : > { %v1778_v49 = vpop.f32.mrf.mxu2 }
 0x28f   : > { %v1808_v24 = vadd.f32 %v1778_v49, %v1562_v33  ;;  %v2024_v39 = vpop.f32.mrf.mxu3 }
 0x291   : > { %v2054_v16 = vadd.f32 %v2024_v39, %v1808_v24 }
 0x293   : > { %v2300_v57 = vadd.f32 %v2270_v15, %v2054_v16 }
 0x295   : > { %2328 = vst [vmem:[%s3705_s27 + $0xd8] sm:$0xff] %v2300_v57 }
 0x296   : > { %2758 = shalt.err (!%p2755_p3)
}
 0x297   : > { %s2795_s22 = smov 128   ;;  %s2796_s23 = smov 8  }
 0x298   : > { %2690 = dma.vmem_to_hbm [thread:$0]  (%p2850_p5), %s2343_s4, 3584, %s2345_s5, %s2330_s13, %s2795_s22, %s2795_s22, %s2796_s23  }
 0x299 PF: > { %p2696_p4 = scmp.ge.s32.totalorder %s2793_s12, 2  ;;  %s2359_s24 = sand.u32 1, %s2781_s9  }
 0x29a   : > { %s2360_s25 = scalar_lea.sflag [#allocation3], %s2359_s24 }
 0x29b   : > { %p2693_p7 = pnand %p2696_p4, %p2854_p6 }
 0x29d   : > { %p2694_p8 = pneg %p2693_p7 }
 0x29f   : > { %2776 = dma.done.wait (%p2694_p8), %s2360_s25, 3584  }
 0x2a0   : > { %2778 = vsyncadd (%p2694_p8), %s2360_s25, 4294963712  ;;  %p12_p9 = scmp.ge.s32.totalorder %s2837_s15, 4   ;;  %s3978_s9 = smov %s2785_s10 }
 0x2a1   : > { %s3979_s10 = smov %s2789_s11  ;;  %s3980_s11 = smov %s2848_s18 }
 0x2a2   : > { %s3981_s12 = smov %s2837_s15  ;;  %14 = sbr.rel (!%p12_p9) target bundleno = 3 (0x3), region = 71 }
 0x2a7   :  { %2366 = vsyncpa [#allocation3], 1 }
 0x2a8   :  { %2368 = vsyncpa [#allocation3 + $0x1], 1 }

</bundles_post_ra>
